<compile_context>
chip_gen: v5e
topology: v5e:2x2
jax: 0.10.0
libtpu: 0.0.40
codegen_flags: <defaults>
</compile_context>

<pallas_src>
import functools

import jax
import jax.numpy as jnp
from jax import lax
from jax.experimental import pallas as pl
from jax.experimental.pallas import tpu as pltpu


def fsl_kernel(xsr_ref, xseg_ref, w1a_ref, w1b_ref, b1_ref, wsp_ref,
               w2_ref, b2_ref, wmask_ref, o_ref, *, W):
    """One batch element per grid step; everything resident in VMEM.

    xsr_ref  : (1, sr_ch, HW)      super-resolution features (flattened NCHW)
    xseg_ref : (1, seg_ch, HW)     segmentation features
    w1a_ref  : (hidden, sr_ch)     1x1 conv weight, sr half
    w1b_ref  : (hidden, seg_ch)    1x1 conv weight, seg half
    b1_ref   : (hidden, 1)
    wsp_ref  : (hidden, 14*hidden) fused (7,1)+(1,7) conv weights (im2col order)
    w2_ref   : (seg_ch, hidden)    final 1x1 conv weight
    b2_ref   : (seg_ch, 1)
    wmask_ref: (7, HW)             per-tap validity mask for the (1,7) conv
    o_ref    : (1, seg_ch, HW)
    """
    HW = xsr_ref.shape[2]
    hidden = w1a_ref.shape[0]

    x_sr = xsr_ref[0].astype(jnp.float32)             # (sr_ch, HW)
    x_seg = xseg_ref[0].astype(jnp.float32)           # (seg_ch, HW)

    # conv1: 1x1 conv + bias + ReLU.  The channel concat is realized as two
    # matmuls against the split weight (mathematically identical, no HBM
    # concat pass in the wrapper).
    conv = (jnp.dot(w1a_ref[...], x_sr, preferred_element_type=jnp.float32)
            + jnp.dot(w1b_ref[...], x_seg, preferred_element_type=jnp.float32)
            + b1_ref[...])
    conv = jnp.maximum(conv, 0.0)                     # (hidden, HW)

    # im2col: 7 H-shifted + 7 W-shifted copies of conv stacked on sublanes, so
    # both separable convs collapse into a single K = 14*hidden matmul.
    zeros_h = jnp.zeros((hidden, 3 * W), jnp.float32)
    pad_h = jnp.concatenate([zeros_h, conv, zeros_h], axis=1)   # (hidden, HW+6W)
    zeros_w = jnp.zeros((hidden, 3), jnp.float32)
    pad_w = jnp.concatenate([zeros_w, conv, zeros_w], axis=1)   # (hidden, HW+6)
    wmask = wmask_ref[...]                                      # (7, HW)

    pieces = []
    for k in range(7):                                # (7,1) taps: shift along H
        pieces.append(pad_h[:, k * W:k * W + HW])
    for k in range(7):                                # (1,7) taps: shift along W
        pieces.append(pad_w[:, k:k + HW] * wmask[k:k + 1, :])
    slab = jnp.concatenate(pieces, axis=0)            # (14*hidden, HW)

    sp = jnp.dot(wsp_ref[...], slab, preferred_element_type=jnp.float32)

    # fusion: ReLU -> 1x1 conv -> Sigmoid
    fused = jnp.maximum(sp, 0.0)
    out = jnp.dot(w2_ref[...], fused, preferred_element_type=jnp.float32)
    out = jax.nn.sigmoid(out + b2_ref[...])           # (seg_ch, HW)

    o_ref[0] = out.astype(o_ref.dtype)


@jax.jit
def fsl_forward(sr_fe, seg_fe, w1, b1, wsp1, wsp2, w2, b2):
    """PyTorch-layout parameters, NCHW activations.

    sr_fe : (B, sr_ch, H, W)            seg_fe: (B, seg_ch, H, W)
    w1    : (hidden, sr_ch+seg_ch, 1, 1)  b1: (hidden,)
    wsp1  : (hidden, hidden, 7, 1)
    wsp2  : (hidden, hidden, 1, 7)
    w2    : (seg_ch, hidden, 1, 1)        b2: (seg_ch,)
    Returns (B, seg_ch, H, W) float32.
    """
    B, sr_ch, H, W = sr_fe.shape
    seg_ch = seg_fe.shape[1]
    hidden = w1.shape[0]
    HW = H * W

    # Lane-dense (C, H*W) views of the NCHW inputs — pure reshape, no transpose.
    x_sr = sr_fe.reshape(B, sr_ch, HW)
    x_seg = seg_fe.reshape(B, seg_ch, HW)

    w1_flat = w1.reshape(hidden, sr_ch + seg_ch)
    w1a = w1_flat[:, :sr_ch]
    w1b = w1_flat[:, sr_ch:]
    b1_ = b1.reshape(hidden, 1)

    # Fused separable-conv weight, ordered to match the kernel's im2col slab:
    # 7 H-taps then 7 W-taps, hidden input channels contiguous within a tap.
    wsp1_k = jnp.transpose(wsp1[:, :, :, 0], (0, 2, 1))   # (out, tap, in)
    wsp2_k = jnp.transpose(wsp2[:, :, 0, :], (0, 2, 1))   # (out, tap, in)
    wsp = jnp.concatenate([wsp1_k.reshape(hidden, 7 * hidden),
                           wsp2_k.reshape(hidden, 7 * hidden)], axis=1)

    w2_ = w2.reshape(seg_ch, hidden)
    b2_ = b2.reshape(seg_ch, 1)

    # Per-tap validity mask for the (1,7) conv (zero where w + tap - 3 leaves
    # the row); computed once on the host side of the jit, tiny.
    w_pos = jnp.arange(HW, dtype=jnp.int32) % W
    wmask = jnp.stack(
        [((w_pos + (k - 3) >= 0) & (w_pos + (k - 3) < W)).astype(jnp.float32)
         for k in range(7)], axis=0)                        # (7, HW)

    kernel = functools.partial(fsl_kernel, W=W)
    out_flat = pl.pallas_call(
        kernel,
        out_shape=jax.ShapeDtypeStruct((B, seg_ch, HW), jnp.float32),
        grid_spec=pltpu.PrefetchScalarGridSpec(
            num_scalar_prefetch=0,
            grid=(B,),
            in_specs=[
                pl.BlockSpec((1, sr_ch, HW), lambda b: (b, 0, 0)),
                pl.BlockSpec((1, seg_ch, HW), lambda b: (b, 0, 0)),
                pl.BlockSpec((hidden, sr_ch), lambda b: (0, 0)),
                pl.BlockSpec((hidden, seg_ch), lambda b: (0, 0)),
                pl.BlockSpec((hidden, 1), lambda b: (0, 0)),
                pl.BlockSpec((hidden, 14 * hidden), lambda b: (0, 0)),
                pl.BlockSpec((seg_ch, hidden), lambda b: (0, 0)),
                pl.BlockSpec((seg_ch, 1), lambda b: (0, 0)),
                pl.BlockSpec((7, HW), lambda b: (0, 0)),
            ],
            out_specs=pl.BlockSpec((1, seg_ch, HW), lambda b: (b, 0, 0)),
        ),
        compiler_params=pltpu.CompilerParams(
            dimension_semantics=("parallel",)),
    )(x_sr, x_seg, w1a, w1b, b1_, wsp, w2_, b2_, wmask)

    # Lane-dense output: plain reshape (no transpose) back to NCHW.
    return out_flat.reshape(B, seg_ch, H, W)


def fsl_reference(sr_fe, seg_fe, w1, b1, wsp1, wsp2, w2, b2):
    """Pure-JAX (lax.conv) reference mirroring the PyTorch forward (NCHW)."""
    dn = ("NCHW", "OIHW", "NCHW")
    hi = lax.Precision.HIGHEST
    x = jnp.concatenate([sr_fe, seg_fe], axis=1)
    conv = lax.conv_general_dilated(x, w1, (1, 1), "VALID",
                                    dimension_numbers=dn, precision=hi)
    conv = jnp.maximum(conv + b1[None, :, None, None], 0.0)
    sp1 = lax.conv_general_dilated(conv, wsp1, (1, 1), ((3, 3), (0, 0)),
                                   dimension_numbers=dn, precision=hi)
    sp2 = lax.conv_general_dilated(conv, wsp2, (1, 1), ((0, 0), (3, 3)),
                                   dimension_numbers=dn, precision=hi)
    fused = lax.conv_general_dilated(jnp.maximum(sp1 + sp2, 0.0), w2, (1, 1),
                                     "VALID", dimension_numbers=dn,
                                     precision=hi)
    return jax.nn.sigmoid(fused + b2[None, :, None, None])


if __name__ == "__main__":
    # Small shapes consistent with the module: B=2, sr_ch=4, seg_ch=4,
    # H=W=16, hidden_state=32.
    B, sr_ch, seg_ch, H, W = 2, 4, 4, 16, 16
    hidden = 32
    Cin = sr_ch + seg_ch

    key = jax.random.PRNGKey(0)
    ks = jax.random.split(key, 8)
    sr_fe = jax.random.normal(ks[0], (B, sr_ch, H, W), jnp.float32)
    seg_fe = jax.random.normal(ks[1], (B, seg_ch, H, W), jnp.float32)

    # Parameters in native PyTorch Conv2d layouts: (out, in, kh, kw).
    w1 = jax.random.normal(ks[2], (hidden, Cin, 1, 1), jnp.float32) * 0.1
    b1 = jax.random.normal(ks[3], (hidden,), jnp.float32) * 0.1
    wsp1 = jax.random.normal(ks[4], (hidden, hidden, 7, 1), jnp.float32) * 0.05
    wsp2 = jax.random.normal(ks[5], (hidden, hidden, 1, 7), jnp.float32) * 0.05
    w2 = jax.random.normal(ks[6], (seg_ch, hidden, 1, 1), jnp.float32) * 0.1
    b2 = jax.random.normal(ks[7], (seg_ch,), jnp.float32) * 0.1

    out = fsl_forward(sr_fe, seg_fe, w1, b1, wsp1, wsp2, w2, b2)
    out = jax.block_until_ready(out)

    ref = fsl_reference(sr_fe, seg_fe, w1, b1, wsp1, wsp2, w2, b2)
    ref = jax.block_until_ready(ref)

    assert out.shape == (B, seg_ch, H, W), out.shape
    max_err = float(jnp.max(jnp.abs(out - ref)))
    assert jnp.allclose(out, ref, rtol=2e-3, atol=2e-3), max_err

    print("KERNEL_OK")
</pallas_src>

<mosaic_0001>
module attributes {stable_mosaic.version = 11 : i64} {
  func.func @fsl_kernel(%arg0: i32, %arg1: memref<1x4x256xf32, #tpu.memory_space<vmem>>, %arg2: memref<1x4x256xf32, #tpu.memory_space<vmem>>, %arg3: memref<32x4xf32, #tpu.memory_space<vmem>>, %arg4: memref<32x4xf32, #tpu.memory_space<vmem>>, %arg5: memref<32x1xf32, #tpu.memory_space<vmem>>, %arg6: memref<32x448xf32, #tpu.memory_space<vmem>>, %arg7: memref<4x32xf32, #tpu.memory_space<vmem>>, %arg8: memref<4x1xf32, #tpu.memory_space<vmem>>, %arg9: memref<7x256xf32, #tpu.memory_space<vmem>>, %arg10: memref<1x4x256xf32, #tpu.memory_space<vmem>>) attributes {dimension_semantics = [#tpu.dimension_semantics<parallel>], iteration_bounds = array<i64: 2>, scalar_prefetch = 0 : i64, scratch_operands = 0 : i64, tpu.core_type = #tpu.core_type<tc>, window_params = [{transform_indices = @transform_0, window_bounds = array<i64: 1, 4, 256>}, {transform_indices = @transform_1, window_bounds = array<i64: 1, 4, 256>}, {pipeline_mode = #tpu.pipeline_mode<synchronous>, transform_indices = @transform_2, window_bounds = array<i64: 32, 4>}, {pipeline_mode = #tpu.pipeline_mode<synchronous>, transform_indices = @transform_3, window_bounds = array<i64: 32, 4>}, {pipeline_mode = #tpu.pipeline_mode<synchronous>, transform_indices = @transform_4, window_bounds = array<i64: 32, 1>}, {pipeline_mode = #tpu.pipeline_mode<synchronous>, transform_indices = @transform_5, window_bounds = array<i64: 32, 448>}, {pipeline_mode = #tpu.pipeline_mode<synchronous>, transform_indices = @transform_6, window_bounds = array<i64: 4, 32>}, {pipeline_mode = #tpu.pipeline_mode<synchronous>, transform_indices = @transform_7, window_bounds = array<i64: 4, 1>}, {pipeline_mode = #tpu.pipeline_mode<synchronous>, transform_indices = @transform_8, window_bounds = array<i64: 7, 256>}, {transform_indices = @transform_9, window_bounds = array<i64: 1, 4, 256>}]} {
    %c0 = arith.constant 0 : index
    %c0_0 = arith.constant 0 : index
    %c0_1 = arith.constant 0 : index
    %0 = vector.load %arg1[%c0, %c0_0, %c0_1] : memref<1x4x256xf32, #tpu.memory_space<vmem>>, vector<1x4x256xf32>
    %1 = vector.shape_cast %0 : vector<1x4x256xf32> to vector<4x256xf32>
    %c0_2 = arith.constant 0 : index
    %c0_3 = arith.constant 0 : index
    %c0_4 = arith.constant 0 : index
    %2 = vector.load %arg2[%c0_2, %c0_3, %c0_4] : memref<1x4x256xf32, #tpu.memory_space<vmem>>, vector<1x4x256xf32>
    %3 = vector.shape_cast %2 : vector<1x4x256xf32> to vector<4x256xf32>
    %c0_5 = arith.constant 0 : index
    %c0_6 = arith.constant 0 : index
    %4 = vector.load %arg3[%c0_5, %c0_6] : memref<32x4xf32, #tpu.memory_space<vmem>>, vector<32x4xf32>
    %cst = arith.constant dense<0.000000e+00> : vector<32x256xf32>
    %5 = tpu.matmul %4, %1, %cst {dimension_numbers = #tpu.dot_dimension_numbers<[1], [0], [0], [1], [0, 0, 1, 1], [], []>} : vector<32x4xf32>, vector<4x256xf32>, vector<32x256xf32> -> vector<32x256xf32>
    %c0_7 = arith.constant 0 : index
    %c0_8 = arith.constant 0 : index
    %6 = vector.load %arg4[%c0_7, %c0_8] : memref<32x4xf32, #tpu.memory_space<vmem>>, vector<32x4xf32>
    %cst_9 = arith.constant dense<0.000000e+00> : vector<32x256xf32>
    %7 = tpu.matmul %6, %3, %cst_9 {dimension_numbers = #tpu.dot_dimension_numbers<[1], [0], [0], [1], [0, 0, 1, 1], [], []>} : vector<32x4xf32>, vector<4x256xf32>, vector<32x256xf32> -> vector<32x256xf32>
    %8 = arith.addf %5, %7 : vector<32x256xf32>
    %c0_10 = arith.constant 0 : index
    %c0_11 = arith.constant 0 : index
    %9 = vector.load %arg5[%c0_10, %c0_11] : memref<32x1xf32, #tpu.memory_space<vmem>>, vector<32x1xf32>
    %10 = vector.broadcast %9 : vector<32x1xf32> to vector<32x256xf32>
    %11 = arith.addf %8, %10 : vector<32x256xf32>
    %cst_12 = arith.constant 0.000000e+00 : f32
    %12 = vector.broadcast %cst_12 : f32 to vector<32x256xf32>
    %13 = arith.maximumf %11, %12 : vector<32x256xf32>
    %cst_13 = arith.constant 0.000000e+00 : f32
    %14 = vector.broadcast %cst_13 : f32 to vector<32x48xf32>
    %15 = tpu.concatenate %14, %13, %14 in 1 : vector<32x48xf32>, vector<32x256xf32>, vector<32x48xf32> -> vector<32x352xf32>
    %cst_14 = arith.constant 0.000000e+00 : f32
    %16 = vector.broadcast %cst_14 : f32 to vector<32x3xf32>
    %17 = tpu.concatenate %16, %13, %16 in 1 : vector<32x3xf32>, vector<32x256xf32>, vector<32x3xf32> -> vector<32x262xf32>
    %c0_15 = arith.constant 0 : index
    %c0_16 = arith.constant 0 : index
    %18 = vector.load %arg9[%c0_15, %c0_16] : memref<7x256xf32, #tpu.memory_space<vmem>>, vector<7x256xf32>
    %19 = vector.extract_strided_slice %15 {offsets = [0, 0], sizes = [32, 256], strides = [1, 1]} : vector<32x352xf32> to vector<32x256xf32>
    %20 = vector.extract_strided_slice %15 {offsets = [0, 16], sizes = [32, 256], strides = [1, 1]} : vector<32x352xf32> to vector<32x256xf32>
    %21 = vector.extract_strided_slice %15 {offsets = [0, 32], sizes = [32, 256], strides = [1, 1]} : vector<32x352xf32> to vector<32x256xf32>
    %22 = vector.extract_strided_slice %15 {offsets = [0, 48], sizes = [32, 256], strides = [1, 1]} : vector<32x352xf32> to vector<32x256xf32>
    %23 = vector.extract_strided_slice %15 {offsets = [0, 64], sizes = [32, 256], strides = [1, 1]} : vector<32x352xf32> to vector<32x256xf32>
    %24 = vector.extract_strided_slice %15 {offsets = [0, 80], sizes = [32, 256], strides = [1, 1]} : vector<32x352xf32> to vector<32x256xf32>
    %25 = vector.extract_strided_slice %15 {offsets = [0, 96], sizes = [32, 256], strides = [1, 1]} : vector<32x352xf32> to vector<32x256xf32>
    %26 = vector.extract_strided_slice %17 {offsets = [0, 0], sizes = [32, 256], strides = [1, 1]} : vector<32x262xf32> to vector<32x256xf32>
    %27 = vector.extract_strided_slice %18 {offsets = [0, 0], sizes = [1, 256], strides = [1, 1]} : vector<7x256xf32> to vector<1x256xf32>
    %28 = vector.broadcast %27 : vector<1x256xf32> to vector<32x256xf32>
    %29 = arith.mulf %26, %28 : vector<32x256xf32>
    %30 = vector.extract_strided_slice %17 {offsets = [0, 1], sizes = [32, 256], strides = [1, 1]} : vector<32x262xf32> to vector<32x256xf32>
    %31 = vector.extract_strided_slice %18 {offsets = [1, 0], sizes = [1, 256], strides = [1, 1]} : vector<7x256xf32> to vector<1x256xf32>
    %32 = vector.broadcast %31 : vector<1x256xf32> to vector<32x256xf32>
    %33 = arith.mulf %30, %32 : vector<32x256xf32>
    %34 = vector.extract_strided_slice %17 {offsets = [0, 2], sizes = [32, 256], strides = [1, 1]} : vector<32x262xf32> to vector<32x256xf32>
    %35 = vector.extract_strided_slice %18 {offsets = [2, 0], sizes = [1, 256], strides = [1, 1]} : vector<7x256xf32> to vector<1x256xf32>
    %36 = vector.broadcast %35 : vector<1x256xf32> to vector<32x256xf32>
    %37 = arith.mulf %34, %36 : vector<32x256xf32>
    %38 = vector.extract_strided_slice %17 {offsets = [0, 3], sizes = [32, 256], strides = [1, 1]} : vector<32x262xf32> to vector<32x256xf32>
    %39 = vector.extract_strided_slice %18 {offsets = [3, 0], sizes = [1, 256], strides = [1, 1]} : vector<7x256xf32> to vector<1x256xf32>
    %40 = vector.broadcast %39 : vector<1x256xf32> to vector<32x256xf32>
    %41 = arith.mulf %38, %40 : vector<32x256xf32>
    %42 = vector.extract_strided_slice %17 {offsets = [0, 4], sizes = [32, 256], strides = [1, 1]} : vector<32x262xf32> to vector<32x256xf32>
    %43 = vector.extract_strided_slice %18 {offsets = [4, 0], sizes = [1, 256], strides = [1, 1]} : vector<7x256xf32> to vector<1x256xf32>
    %44 = vector.broadcast %43 : vector<1x256xf32> to vector<32x256xf32>
    %45 = arith.mulf %42, %44 : vector<32x256xf32>
    %46 = vector.extract_strided_slice %17 {offsets = [0, 5], sizes = [32, 256], strides = [1, 1]} : vector<32x262xf32> to vector<32x256xf32>
    %47 = vector.extract_strided_slice %18 {offsets = [5, 0], sizes = [1, 256], strides = [1, 1]} : vector<7x256xf32> to vector<1x256xf32>
    %48 = vector.broadcast %47 : vector<1x256xf32> to vector<32x256xf32>
    %49 = arith.mulf %46, %48 : vector<32x256xf32>
    %50 = vector.extract_strided_slice %17 {offsets = [0, 6], sizes = [32, 256], strides = [1, 1]} : vector<32x262xf32> to vector<32x256xf32>
    %51 = vector.extract_strided_slice %18 {offsets = [6, 0], sizes = [1, 256], strides = [1, 1]} : vector<7x256xf32> to vector<1x256xf32>
    %52 = vector.broadcast %51 : vector<1x256xf32> to vector<32x256xf32>
    %53 = arith.mulf %50, %52 : vector<32x256xf32>
    %54 = tpu.concatenate %19, %20, %21, %22, %23, %24, %25, %29, %33, %37, %41, %45, %49, %53 in 0 : vector<32x256xf32>, vector<32x256xf32>, vector<32x256xf32>, vector<32x256xf32>, vector<32x256xf32>, vector<32x256xf32>, vector<32x256xf32>, vector<32x256xf32>, vector<32x256xf32>, vector<32x256xf32>, vector<32x256xf32>, vector<32x256xf32>, vector<32x256xf32>, vector<32x256xf32> -> vector<448x256xf32>
    %c0_17 = arith.constant 0 : index
    %c0_18 = arith.constant 0 : index
    %55 = vector.load %arg6[%c0_17, %c0_18] : memref<32x448xf32, #tpu.memory_space<vmem>>, vector<32x448xf32>
    %cst_19 = arith.constant dense<0.000000e+00> : vector<32x256xf32>
    %56 = tpu.matmul %55, %54, %cst_19 {dimension_numbers = #tpu.dot_dimension_numbers<[1], [0], [0], [1], [0, 0, 1, 1], [], []>} : vector<32x448xf32>, vector<448x256xf32>, vector<32x256xf32> -> vector<32x256xf32>
    %cst_20 = arith.constant 0.000000e+00 : f32
    %57 = vector.broadcast %cst_20 : f32 to vector<32x256xf32>
    %58 = arith.maximumf %56, %57 : vector<32x256xf32>
    %c0_21 = arith.constant 0 : index
    %c0_22 = arith.constant 0 : index
    %59 = vector.load %arg7[%c0_21, %c0_22] : memref<4x32xf32, #tpu.memory_space<vmem>>, vector<4x32xf32>
    %cst_23 = arith.constant dense<0.000000e+00> : vector<4x256xf32>
    %60 = tpu.matmul %59, %58, %cst_23 {dimension_numbers = #tpu.dot_dimension_numbers<[1], [0], [0], [1], [0, 0, 1, 1], [], []>} : vector<4x32xf32>, vector<32x256xf32>, vector<4x256xf32> -> vector<4x256xf32>
    %c0_24 = arith.constant 0 : index
    %c0_25 = arith.constant 0 : index
    %61 = vector.load %arg8[%c0_24, %c0_25] : memref<4x1xf32, #tpu.memory_space<vmem>>, vector<4x1xf32>
    %62 = vector.broadcast %61 : vector<4x1xf32> to vector<4x256xf32>
    %63 = arith.addf %60, %62 : vector<4x256xf32>
    %64 = arith.negf %63 : vector<4x256xf32>
    %65 = math.exp %64 : vector<4x256xf32>
    %cst_26 = arith.constant 1.000000e+00 : f32
    %66 = vector.broadcast %cst_26 : f32 to vector<4x256xf32>
    %67 = arith.addf %66, %65 : vector<4x256xf32>
    %68 = arith.divf %66, %67 : vector<4x256xf32>
    %c0_27 = arith.constant 0 : index
    %c0_28 = arith.constant 0 : index
    %c0_29 = arith.constant 0 : index
    %69 = vector.load %arg10[%c0_27, %c0_28, %c0_29] : memref<1x4x256xf32, #tpu.memory_space<vmem>>, vector<1x4x256xf32>
    %70 = vector.shape_cast %69 : vector<1x4x256xf32> to vector<4x256xf32>
    %71 = vector.shape_cast %68 : vector<4x256xf32> to vector<1x4x256xf32>
    tpu.vector_store %arg10[%c0_27, %c0_28, %c0_29], %71 {strides = array<i32>} : memref<1x4x256xf32, #tpu.memory_space<vmem>>, vector<1x4x256xf32>,
    return
  }
  func.func @transform_0(%arg0: i32) -> (i32, i32, i32) {
    %c0_i32 = arith.constant 0 : i32
    %c0_i32_0 = arith.constant 0 : i32
    %c0_i32_1 = arith.constant 0 : i32
    return %arg0, %c0_i32, %c0_i32_0 : i32, i32, i32
  }
  func.func @transform_1(%arg0: i32) -> (i32, i32, i32) {
    %c0_i32 = arith.constant 0 : i32
    %c0_i32_0 = arith.constant 0 : i32
    %c0_i32_1 = arith.constant 0 : i32
    return %arg0, %c0_i32, %c0_i32_0 : i32, i32, i32
  }
  func.func @transform_2(%arg0: i32) -> (i32, i32) {
    %c0_i32 = arith.constant 0 : i32
    %c0_i32_0 = arith.constant 0 : i32
    %c0_i32_1 = arith.constant 0 : i32
    return %c0_i32, %c0_i32_0 : i32, i32
  }
  func.func @transform_3(%arg0: i32) -> (i32, i32) {
    %c0_i32 = arith.constant 0 : i32
    %c0_i32_0 = arith.constant 0 : i32
    %c0_i32_1 = arith.constant 0 : i32
    return %c0_i32, %c0_i32_0 : i32, i32
  }
  func.func @transform_4(%arg0: i32) -> (i32, i32) {
    %c0_i32 = arith.constant 0 : i32
    %c0_i32_0 = arith.constant 0 : i32
    %c0_i32_1 = arith.constant 0 : i32
    return %c0_i32, %c0_i32_0 : i32, i32
  }
  func.func @transform_5(%arg0: i32) -> (i32, i32) {
    %c0_i32 = arith.constant 0 : i32
    %c0_i32_0 = arith.constant 0 : i32
    %c0_i32_1 = arith.constant 0 : i32
    return %c0_i32, %c0_i32_0 : i32, i32
  }
  func.func @transform_6(%arg0: i32) -> (i32, i32) {
    %c0_i32 = arith.constant 0 : i32
    %c0_i32_0 = arith.constant 0 : i32
    %c0_i32_1 = arith.constant 0 : i32
    return %c0_i32, %c0_i32_0 : i32, i32
  }
  func.func @transform_7(%arg0: i32) -> (i32, i32) {
    %c0_i32 = arith.constant 0 : i32
    %c0_i32_0 = arith.constant 0 : i32
    %c0_i32_1 = arith.constant 0 : i32
    return %c0_i32, %c0_i32_0 : i32, i32
  }
  func.func @transform_8(%arg0: i32) -> (i32, i32) {
    %c0_i32 = arith.constant 0 : i32
    %c0_i32_0 = arith.constant 0 : i32
    %c0_i32_1 = arith.constant 0 : i32
    return %c0_i32, %c0_i32_0 : i32, i32
  }
  func.func @transform_9(%arg0: i32) -> (i32, i32, i32) {
    %c0_i32 = arith.constant 0 : i32
    %c0_i32_0 = arith.constant 0 : i32
    %c0_i32_1 = arith.constant 0 : i32
    return %arg0, %c0_i32, %c0_i32_0 : i32, i32, i32
  }
}

</mosaic_0001>

<bundles_post_ra>
// kernel: fsl_forward.1
= control target key start
LH: loop header
LB: loop body
LE: loop exit
PB: predicated region body
PF: predicated region fallthrough
CT: control target
= control target key end

     0   :  { %s2352_s30 = smov 0   ;;  %s3691_s0 = inlined_call_operand.vmem [shape: f32[2,4,256], index: 0, kind: input, shape index: {}]   ;;  %s3692_s1 = inlined_call_operand.vmem [shape: f32[2,4,256], index: 1, kind: input, shape index: {}]   ;;  %s3693_s2 = inlined_call_operand.vmem [shape: f32[32,4], index: 2, kind: input, shape index: {}]   ;;  %s3694_s3 = inlined_call_operand.vmem [shape: f32[32,4], index: 3, kind: input, shape index: {}]   ;;  %s3695_s4 = inlined_call_operand.vmem [shape: f32[32,1], index: 4, kind: input, shape index: {}]   ;;  %s3696_s5 = inlined_call_operand.vmem [shape: f32[32,448], index: 5, kind: input, shape index: {}]   ;;  %s3697_s6 = inlined_call_operand.vmem [shape: f32[4,32], index: 6, kind: input, shape index: {}]   ;;  %s3698_s7 = inlined_call_operand.vmem [shape: f32[4,1], index: 7, kind: input, shape index: {}]   ;;  %s3699_s8 = inlined_call_operand.vmem [shape: f32[7,256], index: 8, kind: input, shape index: {}]   ;;  %s3700_s9 = inlined_call_operand.vmem [shape: f32[2,4,256], index: 9, kind: output, shape index: {}]  }
   0x1 LB: > { %s1811_s10 = sadd.s32 4294967295, %s2281_s30   ;;  %p1815_p0 = scmp.ge.s32.totalorder %s2281_s30, 1  ;;  %s2281_s30 = sphi %s2352_s30, %s19_s30  }
   0x2   : > { %p297_p1 = scmp.lt.s32.totalorder %s2281_s30, 3 }
   0x4   : > { %p298_p2 = pnand %p1815_p0, %p297_p1 }
   0x6   : > { %301 = sbr.rel (%p298_p2) target bundleno = 922 (0x39a), region = 56 }
   0xb   : > { %p338_p3 = scmp.lt.s32.totalorder %s1811_s10, 1  ;;  %v521_v0 = vld [vmem:[%s3695_s4] sm:$0xff]  ;;  %v2283_v1 = vmov 0   ;;  %v522_v3 = vld [vmem:[%s3695_s4 + $0x8] sm:$0xff]  ;;  %vm380_vm0 = vcmask 1043456   ;;  %vm367_vm1 = vcmask 31744  }
   0xc   : > { %1894 = vset.pattern.permute.xlu0 %v2283_v1  ;;  %1895 = vset.pattern.permute.xlu1 %v2283_v1  ;;  %v359_v5 = vld [vmem:[%s3694_s3] sm:$0xff]  ;;  %v523_v8 = vld [vmem:[%s3695_s4 + $0x10] sm:$0xff]  ;;  %v652_v11 = vld [vmem:[%s3699_s8 + $0x8] sm:$0x7f]  ;;  %s2286_s19 = smov 3   ;;  %s2287_s24 = smov 2  }
   0xd   : > { %s3888_s10 = smov (!%p338_p3, %s1811_s10), 1  ;;  %527 = vperm.xlu0 %1894, %v521_v0   ;;  %537 = vperm.xlu1 %1895, %v523_v8   ;;  %v2389_v9 = vld [vmem:[%s3699_s8] sm:$0x7f]  ;;  %v738_v12 = vperm.slane %v652_v11, 4  ;;  %v360_v14 = vld [vmem:[%s3694_s3 + $0x8] sm:$0xff]  ;;  %v524_v17 = vld [vmem:[%s3695_s4 + $0x18] sm:$0xff] }
   0xe   : > { %s2363_s13 = sshll.u32 %s3888_s10, 3  ;;  %v663_v10 = vperm.slane %v2389_v9, 1  ;;  %s2284_s10 = smov 1   ;;  %v355_v13 = vld [vmem:[%s3693_s2] sm:$0xff]  ;;  %v713_v18 = vperm.slane %v2389_v9, 3  ;;  %v664_v19 = vperm.slane %v652_v11, 1 }
   0xf   : > { %s347_s16 = scalar_lea.vmem %s3692_s1, %s2363_s13  ;;  %s342_s21 = scalar_lea.vmem %s3691_s0, %s2363_s13  ;;  %v356_v20 = vld [vmem:[%s3693_s2 + $0x8] sm:$0xff]  ;;  %v361_v21 = vld [vmem:[%s3694_s3 + $0x10] sm:$0xff]  ;;  %v737_v22 = vperm.slane %v2389_v9, 4  ;;  %v688_v23 = vperm.slane %v2389_v9, 2  ;;  %v786_v24 = vperm.slane %v2389_v9, 6  ;;  %v362_v26 = vld [vmem:[%s3694_s3 + $0x18] sm:$0xff] }
  0x10   : > { %v354_v2 = vld [vmem:[%s347_s16] sm:$0xff]  ;;  %s2285_s16 = smov 4   ;;  %v357_v25 = vld [vmem:[%s3693_s2 + $0x10] sm:$0xff]  ;;  %s2288_s27 = smov 6   ;;  %v714_v27 = vperm.slane %v652_v11, 3  ;;  %v787_v28 = vperm.slane %v652_v11, 6 }
  0x11   : > { %364 = vst [vmem:[#allocation1] ss:$2 sm:$0xff] %v354_v2  ;;  %v353_v4 = vld [vmem:[%s342_s21] sm:$0xff]  ;;  %743 = vrot.lane.b32.xlu2 %v738_v12, %s2285_s16  ;;  %v358_v29 = vld [vmem:[%s3693_s2 + $0x18] sm:$0xff]  ;;  %v689_v30 = vperm.slane %v652_v11, 2  ;;  %v761_v31 = vperm.slane %v2389_v9, 5  ;;  %s352_s28 = scalar_lea.vmem %s3700_s9, %s2363_s13 }
  0x12   : > { %s2289_s12 = smov 5   ;;  %v762_v32 = vperm.slane %v652_v11, 5  ;;  %s2290_s14 = smov 48   ;;  %vm585_vm2 = vcmask 392192   ;;  %vm626_vm3 = vcmask 23552   ;;  %vm671_vm4 = vcmask 7168  }
  0x13   : > { %s2291_s15 = smov 80   ;;  %vm794_vm5 = vcmask 48128   ;;  %s2293_s17 = smov 125   ;;  %vm769_vm6 = vcmask 39936   ;;  %vm696_vm7 = vcmask 15360   ;;  %vm1206_vm8 = vcmask 1022976  }
  0x14   : > { %s2294_s18 = smov 32   ;;  %s2296_s20 = smov 127   ;;  %vm1259_vm9 = vcmask 1014784   ;;  %vm925_vm10 = vcmask 654336   ;;  %vm843_vm11 = vcmask 916480   ;;  %vm884_vm12 = vcmask 785408  }
  0x15   : > { %532 = vperm.xlu0 %1894, %v522_v3   ;;  %542 = vperm.xlu1 %1895, %v524_v17   ;;  %s2297_s21 = smov 122   ;;  %s2298_s22 = smov 64   ;;  %vm1047_vm13 = vcmask 261120   ;;  %vm1365_vm14 = vcmask 998400   ;;  %vm966_vm15 = vcmask 523264  }
  0x16   : > { %s2299_s23 = smov 123   ;;  %s2301_s25 = smov 126  }
  0x18   : > { %v365_v6 = vld.sshfl [vmem:[#allocation1] sm:$0xff pattern:$0x75316420]  ;;  %v366_v7 = vld.sshfl [vmem:[#allocation1 + $0x8] sm:$0xff pattern:$0x75316420] }
  0x19   : > { %444 = vst [vmem:[#allocation1] ss:$2 sm:$0xff] %v353_v4  ;;  %1822 = vmatpush.msk.msra.mxu0 %vm380_vm0, %v365_v6  ;;  %1827 = vmatpush.msk.msra.mxu1 %vm380_vm0, %v366_v7 }
  0x1a   : > { %1823 = vmatmul.msk.f32.vlgmr.msra.gmra.mxu0 %vm367_vm1, %v359_v5  ;;  %1828 = vmatmul.msk.f32.vlgmr.msra.gmra.mxu1 %vm367_vm1, %v359_v5 }
  0x1b   : > { %669 = vrot.lane.b32.xlu2 %v664_v19, %s2284_s10 }
  0x1d   : > { %667 = vrot.lane.b32.xlu0 %v663_v10, %s2284_s10  ;;  %741 = vrot.lane.b32.xlu1 %v737_v22, %s2285_s16  ;;  %s2292_s16 = smov 112  }
  0x20   : > { %v445_v15 = vld.sshfl [vmem:[#allocation1] sm:$0xff pattern:$0x75316420]  ;;  %v446_v16 = vld.sshfl [vmem:[#allocation1 + $0x8] sm:$0xff pattern:$0x75316420] }
  0x21   : > { %1832 = vmatpush.msk.msra.mxu2 %vm380_vm0, %v445_v15  ;;  %1837 = vmatpush.msk.msra.mxu3 %vm380_vm0, %v446_v16 }
  0x22   : > { %1833 = vmatmul.msk.f32.vlgmr.msra.gmra.mxu2 %vm367_vm1, %v355_v13  ;;  %1838 = vmatmul.msk.f32.vlgmr.msra.gmra.mxu3 %vm367_vm1, %v355_v13 }
  0x23   : > { %1824 = vmatmul.msk.f32.gmra.mxu0 %vm367_vm1, %v360_v14  ;;  %1829 = vmatmul.msk.f32.gmra.mxu1 %vm367_vm1, %v360_v14 }
  0x24   : > { %790 = vrot.lane.b32.xlu2 %v786_v24, %s2288_s27 }
  0x25   : > { %717 = vrot.lane.b32.xlu0 %v713_v18, %s2286_s19  ;;  %719 = vrot.lane.b32.xlu1 %v714_v27, %s2286_s19 }
  0x2a   : > { %1834 = vmatmul.msk.f32.gmra.mxu2 %vm367_vm1, %v356_v20  ;;  %1839 = vmatmul.msk.f32.gmra.mxu3 %vm367_vm1, %v356_v20 }
  0x2b   : > { %1825 = vmatmul.msk.f32.gmra.mxu0 %vm367_vm1, %v361_v21  ;;  %1830 = vmatmul.msk.f32.gmra.mxu1 %vm367_vm1, %v361_v21 }
  0x2c   : > { %767 = vrot.lane.b32.xlu2 %v762_v32, %s2289_s12 }
  0x2d   : > { %692 = vrot.lane.b32.xlu0 %v688_v23, %s2287_s24  ;;  %694 = vrot.lane.b32.xlu1 %v689_v30, %s2287_s24  ;;  %s2300_s24 = smov 124  }
  0x32   : > { %1835 = vmatmul.msk.f32.gmra.mxu2 %vm367_vm1, %v357_v25  ;;  %1840 = vmatmul.msk.f32.gmra.mxu3 %vm367_vm1, %v357_v25 }
  0x33   : > { %1826 = vmatmul.msk.f32.gmra.mxu0 %vm367_vm1, %v362_v26  ;;  %1831 = vmatmul.msk.f32.gmra.mxu1 %vm367_vm1, %v362_v26 }
  0x35   : > { %792 = vrot.lane.b32.xlu0 %v787_v28, %s2288_s27  ;;  %765 = vrot.lane.b32.xlu1 %v761_v31, %s2289_s12 }
  0x3a   : > { %1836 = vmatmul.msk.f32.gmra.mxu2 %vm367_vm1, %v358_v29  ;;  %1841 = vmatmul.msk.f32.gmra.mxu3 %vm367_vm1, %v358_v29 }
  0x6b   : > { %v2456_v16 = vpop.permute.xlu2 %743 }
  0x75   : > { %v2458_v17 = vpop.permute.xlu2 %669 }
  0x7e   : > { %v2460_v18 = vpop.permute.xlu2 %790 }
  0x7f   : > { %v528_v35 = vpop.permute.xlu0 %527  ;;  %v538_v56 = vpop.permute.xlu1 %537 }
  0x86   : > { %v2464_v20 = vpop.permute.xlu2 %767 }
  0x87   : > { %v533_v49 = vpop.permute.xlu0 %532  ;;  %v543_v4 = vpop.permute.xlu1 %542 }
  0x8f   : > { %v2462_v19 = vpop.permute.xlu1 %741  ;;  %v2466_v21 = vpop.permute.xlu0 %667 }
  0x97   : > { %v402_v33 = vpop.f32.mrf.mxu0  ;;  %v431_v34 = vpop.f32.mrf.mxu1 }
  0x98   : > { %v2468_v22 = vpop.permute.xlu1 %719  ;;  %v2472_v24 = vpop.permute.xlu0 %717 }
  0xa0   : > { %v405_v39 = vpop.f32.mrf.mxu0  ;;  %v434_v41 = vpop.f32.mrf.mxu1 }
  0xa1   : > { %v2474_v25 = vpop.permute.xlu1 %694  ;;  %v2476_v27 = vpop.permute.xlu0 %692 }
  0xa5   : > { %v480_v36 = vpop.f32.mrf.mxu2  ;;  %v509_v37 = vpop.f32.mrf.mxu3 }
  0xa6   : > { %v481_v38 = vadd.f32 %v480_v36, %v402_v33  ;;  %v510_v43 = vadd.f32 %v509_v37, %v431_v34 }
  0xa8   : > { %v545_v40 = vadd.f32 %v528_v35, %v481_v38  ;;  %v546_v48 = vadd.f32 %v528_v35, %v510_v43  ;;  %v408_v52 = vpop.f32.mrf.mxu0  ;;  %v437_v53 = vpop.f32.mrf.mxu1 }
  0xa9   : > { %v2478_v28 = vpop.permute.xlu1 %765  ;;  %v2503_v38 = vpop.permute.xlu0 %792 }
  0xaa   : > { %v553_v42 = vmax.f32 %v545_v40, 0.0  ;;  %v554_v57 = vmax.f32 %v546_v48, 0.0  ;;  %v2508_v40 = vsel %vm626_vm3, %v2472_v24, %v2468_v22  ;;  %v2533_v48 = vsel %vm794_vm5, %v2460_v18, %v2503_v38 }
  0xab   : > { %vm1100_vm5 = vcmask 1039360  }
  0xac   : > { %610 = vrot.lane.b32.xlu1 %v553_v42, %s2286_s19  ;;  %569 = vrot.lane.b32.xlu2 %v553_v42, %s2290_s14 }
  0xad   : > { %v483_v44 = vpop.f32.mrf.mxu2  ;;  %v512_v45 = vpop.f32.mrf.mxu3 }
  0xae   : > { %v484_v46 = vadd.f32 %v483_v44, %v405_v39  ;;  %v513_v47 = vadd.f32 %v512_v45, %v434_v41 }
  0xb0   : > { %v547_v50 = vadd.f32 %v533_v49, %v484_v46  ;;  %v548_v51 = vadd.f32 %v533_v49, %v513_v47  ;;  %v411_v1 = vpop.f32.mrf.mxu0  ;;  %v440_v2 = vpop.f32.mrf.mxu1  ;;  %v2525_v47 = vsel %vm671_vm4, %v2466_v21, %v2458_v17  ;;  %vm1312_vm4 = vcmask 1006592  }
  0xb2   : > { %v555_v54 = vmax.f32 %v547_v50, 0.0  ;;  %v556_v55 = vmax.f32 %v548_v51, 0.0 }
  0xb4   : > { %573 = vrot.lane.b32.xlu0 %v555_v54, %s2290_s14  ;;  %616 = vrot.lane.b32.xlu1 %v556_v55, %s2286_s19  ;;  %v1896_v0 = vpack.i.bf16 %v556_v55, %v554_v57 }
  0xb5   : > { %612 = vrot.lane.b32.xlu2 %v554_v57, %s2286_s19  ;;  %v486_v58 = vpop.f32.mrf.mxu2  ;;  %v515_v59 = vpop.f32.mrf.mxu3 }
  0xb6   : > { %v487_v60 = vadd.f32 %v486_v58, %v408_v52  ;;  %v516_v62 = vadd.f32 %v515_v59, %v437_v53 }
  0xb8   : > { %v549_v61 = vadd.f32 %v538_v56, %v487_v60  ;;  %v550_v3 = vadd.f32 %v538_v56, %v516_v62 }
  0xba   : > { %v557_v63 = vmax.f32 %v549_v61, 0.0  ;;  %v558_v10 = vmax.f32 %v550_v3, 0.0 }
  0xbc   : > { %614 = vrot.lane.b32.xlu0 %v555_v54, %s2286_s19  ;;  %577 = vrot.lane.b32.xlu1 %v557_v63, %s2290_s14 }
  0xbd   : > { %1897 = vrot.lane.b32.xlu2 %v1896_v0, %s2290_s14  ;;  %v489_v5 = vpop.f32.mrf.mxu2  ;;  %v518_v6 = vpop.f32.mrf.mxu3 }
  0xbe   : > { %v490_v7 = vadd.f32 %v489_v5, %v411_v1  ;;  %v519_v8 = vadd.f32 %v518_v6, %v440_v2  ;;  %v2577_v1 = vsel %vm769_vm6, %v2478_v28, %v2464_v20 }
  0xc0   : > { %v551_v11 = vadd.f32 %v543_v4, %v490_v7  ;;  %v552_v12 = vadd.f32 %v543_v4, %v519_v8 }
  0xc2   : > { %v559_v13 = vmax.f32 %v551_v11, 0.0  ;;  %v560_v14 = vmax.f32 %v552_v12, 0.0 }
  0xc4   : > { %620 = vrot.lane.b32.xlu0 %v558_v10, %s2286_s19  ;;  %622 = vrot.lane.b32.xlu1 %v559_v13, %s2286_s19  ;;  %v1901_v15 = vpack.i.bf16 %v560_v14, %v558_v10  ;;  %v2598_v10 = vsel %vm367_vm1, %v2462_v19, %v2456_v16  ;;  %vm1153_vm1 = vcmask 1031168  }
  0xc5   : > { %618 = vrot.lane.b32.xlu2 %v557_v63, %s2286_s19 }
  0xcc   : > { %581 = vrot.lane.b32.xlu0 %v559_v13, %s2290_s14 }
  0xcd   : > { %1902 = vrot.lane.b32.xlu2 %v1901_v15, %s2290_s14  ;;  %v2612_v15 = vsel %vm696_vm7, %v2476_v27, %v2474_v25 }
  0xd5   : > { %624 = vrot.lane.b32.xlu2 %v560_v14, %s2286_s19  ;;  %s2295_s19 = smov 96  }
 0x106   : > { %v2470_v23 = vpop.permute.xlu2 %569 }
 0x107   : > { %3740 = vst [vmem:[#allocation2_spill] sm:$0xff] %v2470_v23  ;;  %v602_v32 = vsel %vm585_vm2, 0.0, %v2470_v23 }
 0x10f   : > { %v613_v26 = vpop.permute.xlu2 %612 }
 0x110   : > { %v2542_v53 = vsel %vm626_vm3, %v613_v26, 0.0 }
 0x111   : > { %v2553_v58 = vmul.f32 %v2474_v25, %v2542_v53  ;;  %v2566_v63 = vmul.f32 %v2503_v38, %v2542_v53 }
 0x113   : > { %3745 = vst [vmem:[#allocation7_spill] sm:$0xff] %v2553_v58 }
 0x114   : > { %3747 = vst [vmem:[#allocation9_spill] sm:$0xff] %v2566_v63 }
 0x117   : > { %v1898_v29 = vpop.permute.xlu2 %1897 }
 0x118   : > { %v1900_v30 = vunpack.i.h.bf16 %v1898_v29  ;;  %v1899_v31 = vunpack.i.l.bf16 %v1898_v29 }
 0x11a   : > { %v2483_v33 = vsel %vm585_vm2, %v1900_v30, 0.0  ;;  %v2487_v34 = vsel %vm585_vm2, %v2470_v23, %v1899_v31  ;;  %v2490_v35 = vsel %vm585_vm2, %v1899_v31, 0.0 }
 0x11b   : > { %3741 = vst [vmem:[#allocation3_spill] sm:$0xff] %v2483_v33  ;;  %v2493_v36 = vpack.i.bf16 %v2487_v34, %v602_v32  ;;  %v2497_v37 = vpack.i.bf16 %v2490_v35, %v2483_v33 }
 0x11c   : > { %3742 = vst [vmem:[#allocation4_spill] sm:$0xff] %v2487_v34 }
 0x11d   : > { %1912 = vrot.lane.b32.xlu1 %v2493_v36, %s2291_s15  ;;  %1907 = vrot.lane.b32.xlu0 %v2493_v36, %s2292_s16 }
 0x11e   : > { %v611_v39 = vpop.permute.xlu1 %610 }
 0x11f   : > { %v2511_v41 = vsel %vm626_vm3, %v611_v39, %v613_v26  ;;  %v2514_v42 = vsel %vm626_vm3, 0.0, %v611_v39  ;;  %v2520_v45 = vpop.permute.xlu2 %618  ;;  %v653_v26 = vperm.slane %v2389_v9, 0 }
 0x120   : > { %3743 = vst [vmem:[#allocation5_spill] sm:$0xff] %v2511_v41  ;;  %v725_v43 = vmul.f32 %v2472_v24, %v2514_v42  ;;  %v726_v44 = vmul.f32 %v2508_v40, %v2511_v41  ;;  %v676_v51 = vmul.f32 %v2466_v21, %v2514_v42  ;;  %v677_v52 = vmul.f32 %v2525_v47, %v2511_v41 }
 0x121   : > { %v799_v55 = vmul.f32 %v2460_v18, %v2514_v42  ;;  %v800_v56 = vmul.f32 %v2533_v48, %v2511_v41  ;;  %v774_v6 = vmul.f32 %v2478_v28, %v2514_v42  ;;  %v775_v7 = vmul.f32 %v2577_v1, %v2511_v41 }
 0x122   : > { %v1941_v46 = vpack.i.bf16 %v726_v44, %v725_v43  ;;  %v1956_v57 = vpack.i.bf16 %v677_v52, %v676_v51  ;;  %v749_v29 = vmul.f32 %v2462_v19, %v2514_v42  ;;  %v2626_v31 = vmul.f32 %v2476_v27, %v2514_v42 }
 0x123   : > { %v1951_v60 = vpack.i.bf16 %v800_v56, %v799_v55  ;;  %v1961_v14 = vpack.i.bf16 %v775_v7, %v774_v6  ;;  %v2630_v9 = vmul.f32 %v2612_v15, %v2511_v41  ;;  %v2650_v52 = vmul.f32 %v2458_v17, %v2542_v53 }
 0x124   : > { %1942 = vrot.lane.b32.xlu2 %v1941_v46, %s2293_s17  ;;  %v2642_v46 = vsel %vm626_vm3, 0.0, %v2520_v45 }
 0x125   : > { %1922 = vrot.lane.b32.xlu1 %v2493_v36, %s2294_s18  ;;  %1917 = vrot.lane.b32.xlu0 %v2493_v36, %s2295_s19  ;;  %v659_v56 = vmul.f32 %v653_v26, %v2642_v46  ;;  %v1946_v7 = vpack.i.bf16 %v2630_v9, %v2626_v31 }
 0x126   : > { %v2535_v49 = vpop.permute.xlu0 %573  ;;  %v617_v50 = vpop.permute.xlu1 %616 }
 0x127   : > { %3744 = vst [vmem:[#allocation6_spill] sm:$0xff] %v2535_v49  ;;  %v2545_v54 = vsel %vm626_vm3, %v617_v50, 0.0  ;;  %v2559_v61 = vpop.permute.xlu2 %1902  ;;  %v2585_v4 = vsel %vm585_vm2, %v2535_v49, %v1900_v30  ;;  %v2589_v5 = vsel %vm585_vm2, 0.0, %v2535_v49  ;;  %v750_v30 = vmul.f32 %v2598_v10, %v2511_v41 }
 0x128   : > { %v2557_v59 = vmul.f32 %v2474_v25, %v2545_v54  ;;  %v2570_v0 = vmul.f32 %v2503_v38, %v2545_v54  ;;  %3749 = vst [vmem:[#allocation11_spill] sm:$0xff] %v2585_v4  ;;  %v2602_v11 = vpack.i.bf16 %v2585_v4, %v2589_v5  ;;  %v3701_v6 = vunpack.i.h.bf16 %v2559_v61 }
 0x129   : > { %v2719_v41 = vmul.f32 %v2464_v20, %v2545_v54 }
 0x12a   : > { %3746 = vst [vmem:[#allocation8_spill] sm:$0xff] %v2557_v59 }
 0x12b   : > { %3748 = vst [vmem:[#allocation10_spill] sm:$0xff] %v2570_v0 }
 0x12c   : > { %1957 = vrot.lane.b32.xlu2 %v1956_v57, %s2296_s20  ;;  %v1936_v57 = vpack.i.bf16 %v750_v30, %v749_v29 }
 0x12d   : > { %1927 = vrot.lane.b32.xlu1 %v2493_v36, %s2290_s14  ;;  %1952 = vrot.lane.b32.xlu0 %v1951_v60, %s2297_s21  ;;  %v655_v60 = vmul.f32 %v653_v26, %v2514_v42 }
 0x12e   : > { %v2579_v2 = vpop.permute.xlu1 %577  ;;  %v615_v8 = vpop.permute.xlu0 %614 }
 0x12f   : > { %v2605_v12 = vsel %vm626_vm3, %v615_v8, %v617_v50  ;;  %v2608_v13 = vsel %vm626_vm3, 0.0, %v615_v8  ;;  %v625_v32 = vpop.permute.xlu2 %624 }
 0x130   : > { %v752_v43 = vmul.f32 %v2462_v19, %v2608_v13  ;;  %v753_v44 = vmul.f32 %v2598_v10, %v2605_v12  ;;  %v728_v3 = vmul.f32 %v2472_v24, %v2608_v13  ;;  %v729_v42 = vmul.f32 %v2508_v40, %v2605_v12 }
 0x131   : > { %v704_v30 = vmul.f32 %v2476_v27, %v2608_v13  ;;  %v705_v31 = vmul.f32 %v2612_v15, %v2605_v12  ;;  %v650_v23 = vsel %vm626_vm3, %v625_v32, 0.0  ;;  %v802_v0 = vmul.f32 %v2460_v18, %v2608_v13 }
 0x132   : > { %v803_v63 = vmul.f32 %v2533_v48, %v2605_v12  ;;  %v2001_v59 = vpack.i.bf16 %v729_v42, %v728_v3  ;;  %v2757_v3 = vmul.f32 %v2468_v22, %v650_v23 }
 0x133   : > { %v2006_v58 = vpack.i.bf16 %v705_v31, %v704_v30  ;;  %v2763_v30 = vmul.f32 %v2503_v38, %v650_v23 }
 0x134   : > { %1967 = vrot.lane.b32.xlu2 %v2602_v11, %s2291_s15 }
 0x135   : > { %1932 = vrot.lane.b32.xlu1 %v2493_v36, %s2298_s22  ;;  %1962 = vrot.lane.b32.xlu0 %v1961_v14, %s2299_s23  ;;  %v2638_v36 = vmul.f32 %v2464_v20, %v2542_v53  ;;  %v1996_v14 = vpack.i.bf16 %v753_v44, %v752_v43 }
 0x136   : > { %v623_v39 = vpop.permute.xlu1 %622  ;;  %v2677_v43 = vpop.permute.xlu0 %620 }
 0x137   : > { %v2645_v50 = vsel %vm626_vm3, %v623_v39, %v625_v32  ;;  %v646_v51 = vsel %vm626_vm3, 0.0, %v623_v39  ;;  %v657_v39 = vmul.f32 %v653_v26, %v2608_v13  ;;  %v649_v49 = vsel %vm626_vm3, %v2677_v43, 0.0 }
 0x138   : > { %3750 = vst [vmem:[#allocation12_spill] sm:$0xff] %v2645_v50  ;;  %v661_v55 = vmul.f32 %v653_v26, %v646_v51  ;;  %v2658_v8 = vmul.f32 %v2462_v19, %v646_v51  ;;  %v2665_v29 = vmul.f32 %v2598_v10, %v2645_v50  ;;  %v2674_v9 = vmul.f32 %v2476_v27, %v646_v51 }
 0x139   : > { %v2687_v62 = vmul.f32 %v2472_v24, %v646_v51  ;;  %v2692_v26 = vsel %vm585_vm2, %v3701_v6, 0.0  ;;  %v2706_v44 = vmul.f32 %v2525_v47, %v2645_v50  ;;  %v2715_v34 = vmul.f32 %v2533_v48, %v2645_v50 }
 0x13a   : > { %1439 = vmatpush.msrb.mxu1 %v661_v55  ;;  %v2684_v55 = vmul.f32 %v2612_v15, %v2645_v50  ;;  %v2733_v33 = vmul.f32 %v2478_v28, %v646_v51  ;;  %v2737_v32 = vmul.f32 %v2458_v17, %v2545_v54  ;;  %v2745_v6 = vmul.f32 %v2577_v1, %v2645_v50 }
 0x13b   : > { %3751 = vst [vmem:[#allocation13_spill] sm:$0xff] %v2687_v62  ;;  %v2760_v42 = vmul.f32 %v2503_v38, %v649_v49  ;;  %v2766_v31 = vmul.f32 %v2474_v25, %v649_v49  ;;  %v3757_v38 = vunpack.i.l.bf16 %v2559_v61 }
 0x13c   : > { %1440 = vmatpush.msrb.mxu1 %v659_v56  ;;  %1997 = vrot.lane.b32.xlu2 %v1996_v14, %s2300_s24  ;;  %v2699_v56 = vmul.f32 %v2508_v40, %v2645_v50  ;;  %v2702_v14 = vmul.f32 %v2466_v21, %v646_v51  ;;  %3753 = vst [vmem:[#allocation15_spill] sm:$0xff] %v2706_v44 }
 0x13d   : > { %1937 = vrot.lane.b32.xlu1 %v1936_v57, %s2300_s24  ;;  %1972 = vrot.lane.b32.xlu0 %v2602_v11, %s2295_s19  ;;  %v2711_v57 = vmul.f32 %v2460_v18, %v646_v51  ;;  %3755 = vst [vmem:[#allocation17_spill] sm:$0xff] %v2715_v34  ;;  %v2751_v51 = vmul.f32 %v2456_v16, %v650_v23  ;;  %v2782_v62 = vsel %vm585_vm2, %v3757_v38, 0.0 }
 0x13e   : > { %3752 = vst [vmem:[#allocation14_spill] sm:$0xff] %v2702_v14  ;;  %1441 = vmatpush.msrb.mxu1 %v657_v39  ;;  %v777_v39 = vmul.f32 %v2478_v28, %v2608_v13  ;;  %v2748_v14 = vmul.f32 %v2456_v16, %v649_v49  ;;  %v2754_v44 = vmul.f32 %v2468_v22, %v649_v49 }
 0x13f   : > { %3754 = vst [vmem:[#allocation16_spill] sm:$0xff] %v2711_v57  ;;  %v2774_v57 = vmul.f32 %v2474_v25, %v650_v23  ;;  %v2777_v34 = vmul.f32 %v2464_v20, %v649_v49  ;;  %v2791_v50 = vmul.f32 %v2464_v20, %v650_v23  ;;  %v2796_v38 = vmul.f32 %v2458_v17, %v649_v49 }
 0x140   : > { %1442 = vmatpush.msrb.mxu1 %v655_v60  ;;  %3756 = vst [vmem:[#allocation18_spill] sm:$0xff] %v2751_v51  ;;  %v2799_v51 = vmul.f32 %v2458_v17, %v650_v23  ;;  %v2011_v23 = vpack.i.bf16 %v803_v63, %v802_v0  ;;  %v679_v20 = vmul.f32 %v2466_v21, %v2608_v13 }
 0x141   : > { %v680_v25 = vmul.f32 %v2525_v47, %v2605_v12  ;;  %v754_v49 = vmul.f32 %v2456_v16, %v2545_v54  ;;  %v751_v63 = vmul.f32 %v2456_v16, %v2542_v53  ;;  %v730_v13 = vmul.f32 %v2468_v22, %v2545_v54 }
 0x142   : > { %v2241_v17 = vpack.i.bf16 %v2796_v38, %v2799_v51  ;;  %v3758_v16 = vunpack.i.l.bf16 %v2559_v61 }
 0x143   : > { %v2016_v0 = vpack.i.bf16 %v680_v25, %v679_v20 }
 0x144   : > { %2002 = vrot.lane.b32.xlu2 %v2001_v59, %s2293_s17  ;;  %v2221_v59 = vpack.i.bf16 %v2754_v44, %v2757_v3  ;;  %v2843_v25 = vsel %vm585_vm2, %v2579_v2, %v3758_v16 }
 0x145   : > { %1947 = vrot.lane.b32.xlu1 %v1946_v7, %s2301_s25  ;;  %2007 = vrot.lane.b32.xlu0 %v2006_v58, %s2301_s25  ;;  %v2803_v58 = vpack.i.bf16 %v2782_v62, %v2692_v26  ;;  %v778_v7 = vmul.f32 %v2577_v1, %v2605_v12  ;;  %3759 = vst [vmem:[#allocation19_spill] sm:$0xff] %v2843_v25 }
 0x147   : > { %v2021_v60 = vpack.i.bf16 %v778_v7, %v777_v39  ;;  %v2026_v39 = vpack.i.bf16 %v751_v63, %v754_v49  ;;  %v727_v7 = vmul.f32 %v2468_v22, %v2542_v53  ;;  %v2051_v22 = vpack.i.bf16 %v2589_v5, %v2843_v25 }
 0x148   : > { %v2856_v53 = vsel %vm626_vm3, %v2520_v45, %v2677_v43  ;;  %v707_v43 = vmul.f32 %v2476_v27, %v2642_v46  ;;  %vm3294_vm3 = vmneg %vm585_vm2 }
 0x149   : > { %v2031_v20 = vpack.i.bf16 %v727_v7, %v730_v13  ;;  %v732_v54 = vmul.f32 %v2508_v40, %v2856_v53  ;;  %v708_v45 = vmul.f32 %v2612_v15, %v2856_v53  ;;  %v756_v5 = vmul.f32 %v2598_v10, %v2856_v53 }
 0x14a   : > { %v755_v40 = vmul.f32 %v2462_v19, %v2642_v46  ;;  %v683_v15 = vmul.f32 %v2525_v47, %v2856_v53  ;;  %v806_v10 = vmul.f32 %v2533_v48, %v2856_v53  ;;  %v781_v27 = vmul.f32 %v2577_v1, %v2856_v53  ;;  %v2893_v47 = vpop.permute.xlu0 %581 }
 0x14b   : > { %v682_v19 = vmul.f32 %v2466_v21, %v2642_v46  ;;  %v3760_v21 = vunpack.i.h.bf16 %v2559_v61  ;;  %v2126_v61 = vpack.i.bf16 %v2692_v26, %v2585_v4 }
 0x14c   : > { %2012 = vrot.lane.b32.xlu2 %v2011_v23, %s2297_s21  ;;  %v2066_v63 = vpack.i.bf16 %v756_v5, %v755_v40  ;;  %v3765_v5 = vpack.i.bf16 %v2684_v55, %v2674_v9  ;;  %v3772_v9 = vld [vmem:[#allocation17_spill] sm:$0xff]  ;;  %v3773_v55 = vld [vmem:[#allocation16_spill] sm:$0xff] }
 0x14d   : > { %1977 = vrot.lane.b32.xlu1 %v2602_v11, %s2294_s18  ;;  %2022 = vrot.lane.b32.xlu0 %v2021_v60, %s2299_s23  ;;  %v2835_v60 = vsel %vm585_vm2, 0.0, %v2579_v2  ;;  %v2086_v13 = vpack.i.bf16 %v683_v15, %v682_v19 }
 0x14e   : > { %v2036_v49 = vpack.i.bf16 %v2843_v25, %v2835_v60 }
 0x154   : > { %2017 = vrot.lane.b32.xlu2 %v2016_v0, %s2296_s20  ;;  %v805_v0 = vmul.f32 %v2460_v18, %v2642_v46  ;;  %v2903_v18 = vsel %vm585_vm2, %v2893_v47, %v3760_v21 }
 0x155   : > { %1982 = vrot.lane.b32.xlu1 %v2602_v11, %s2290_s14  ;;  %2027 = vrot.lane.b32.xlu0 %v2026_v39, %s2300_s24  ;;  %v780_v39 = vmul.f32 %v2478_v28, %v2642_v46  ;;  %3761 = vst [vmem:[#allocation20_spill] sm:$0xff] %v2903_v18  ;;  %v605_v28 = vsel %vm585_vm2, 0.0, %v2893_v47 }
 0x156   : > { %v2081_v7 = vpack.i.bf16 %v806_v10, %v805_v0  ;;  %v2121_v1 = vpack.i.bf16 %v2903_v18, %v605_v28  ;;  %v3774_v10 = vpack.i.bf16 %v3772_v9, %v3773_v55  ;;  %v3775_v0 = vld [vmem:[#allocation7_spill] sm:$0xff] }
 0x157   : > { %v2091_v16 = vpack.i.bf16 %v781_v27, %v780_v39  ;;  %v3776_v39 = vld [vmem:[#allocation8_spill] sm:$0xff] }
 0x15c   : > { %2032 = vrot.lane.b32.xlu2 %v2031_v20, %s2293_s17 }
 0x15d   : > { %1987 = vrot.lane.b32.xlu1 %v2602_v11, %s2298_s22  ;;  %2037 = vrot.lane.b32.xlu0 %v2036_v49, %s2291_s15  ;;  %v731_v11 = vmul.f32 %v2472_v24, %v2642_v46  ;;  %v2076_v24 = vpack.i.bf16 %v708_v45, %v707_v43  ;;  %v2096_v46 = vpack.i.bf16 %v605_v28, %v2490_v35 }
 0x15e   : > { %v2116_v45 = vpack.i.bf16 %v2835_v60, %v2903_v18  ;;  %v3769_v60 = vld [vmem:[#allocation15_spill] sm:$0xff] }
 0x15f   : > { %v2071_v23 = vpack.i.bf16 %v732_v54, %v731_v11  ;;  %v3762_v54 = vpack.i.bf16 %v2665_v29, %v2658_v8  ;;  %v3766_v8 = vld [vmem:[#allocation13_spill] sm:$0xff] }
 0x160   : > { %v3767_v29 = vpack.i.bf16 %v2699_v56, %v3766_v8 }
 0x164   : > { %2052 = vrot.lane.b32.xlu2 %v2051_v22, %s2292_s16 }
 0x165   : > { %1992 = vrot.lane.b32.xlu1 %v2497_v37, %s2291_s15  ;;  %2042 = vrot.lane.b32.xlu0 %v2036_v49, %s2295_s19 }
 0x16c   : > { %2072 = vrot.lane.b32.xlu2 %v2071_v23, %s2293_s17 }
 0x16d   : > { %2047 = vrot.lane.b32.xlu1 %v2036_v49, %s2294_s18  ;;  %2057 = vrot.lane.b32.xlu0 %v2036_v49, %s2290_s14 }
 0x174   : > { %2077 = vrot.lane.b32.xlu2 %v2076_v24, %s2301_s25 }
 0x175   : > { %2062 = vrot.lane.b32.xlu1 %v2036_v49, %s2298_s22  ;;  %2067 = vrot.lane.b32.xlu0 %v2066_v63, %s2300_s24  ;;  %v3770_v63 = vld [vmem:[#allocation14_spill] sm:$0xff] }
 0x176   : > { %v3771_v15 = vpack.i.bf16 %v3769_v60, %v3770_v63  ;;  %v3782_v63 = vld [vmem:[#allocation18_spill] sm:$0xff] }
 0x17c   : > { %2087 = vrot.lane.b32.xlu2 %v2086_v13, %s2296_s20  ;;  %v3777_v13 = vpack.i.bf16 %v3775_v0, %v3776_v39  ;;  %v3787_v39 = vpack.i.bf16 %v2760_v42, %v2763_v30  ;;  %v3790_v42 = vpack.i.bf16 %v2766_v31, %v2774_v57  ;;  %v3791_v30 = vpack.i.bf16 %v2777_v34, %v2791_v50 }
 0x17d   : > { %2082 = vrot.lane.b32.xlu1 %v2081_v7, %s2297_s21  ;;  %2092 = vrot.lane.b32.xlu0 %v2091_v16, %s2299_s23  ;;  %v3778_v7 = vpack.i.bf16 %v2745_v6, %v2733_v33  ;;  %v3792_v57 = vpack.i.bf16 %v2638_v36, %v2719_v41  ;;  %v3793_v34 = vpack.i.bf16 %v2650_v52, %v2737_v32  ;;  %v1651_v41 = vld [vmem:[%s3698_s7] sm:$0xf] }
 0x17e   : > { %v2897_v48 = vpop.permute.xlu2 %1942 }
 0x184   : > { %2122 = vrot.lane.b32.xlu2 %v2121_v1, %s2290_s14 }
 0x185   : > { %2097 = vrot.lane.b32.xlu1 %v2096_v46, %s2292_s16  ;;  %2107 = vrot.lane.b32.xlu0 %v2121_v1, %s2295_s19  ;;  %v3719_v46 = vunpack.i.h.bf16 %v2897_v48 }
 0x186   : > { %v2912_v20 = vpop.permute.xlu2 %1957 }
 0x18c   : > { %2137 = vrot.lane.b32.xlu2 %v2803_v58, %s2291_s15 }
 0x18d   : > { %2102 = vrot.lane.b32.xlu1 %v2121_v1, %s2291_s15  ;;  %2127 = vrot.lane.b32.xlu0 %v2126_v61, %s2292_s16 }
 0x18e   : > { %v2920_v49 = vpop.permute.xlu2 %1967 }
 0x18f   : > { %v2922_v35 = vpop.permute.xlu1 %1912  ;;  %v2924_v22 = vpop.permute.xlu0 %1907  ;;  %v1970_v38 = vunpack.i.h.bf16 %v2920_v49 }
 0x194   : > { %2152 = vrot.lane.b32.xlu2 %v3762_v54, %s2300_s24 }
 0x195   : > { %2112 = vrot.lane.b32.xlu1 %v2121_v1, %s2294_s18  ;;  %2142 = vrot.lane.b32.xlu0 %v2803_v58, %s2295_s19 }
 0x196   : > { %v2933_v26 = vpop.permute.xlu2 %1997 }
 0x197   : > { %v2935_v11 = vpop.permute.xlu1 %1922  ;;  %v2937_v23 = vpop.permute.xlu0 %1917 }
 0x198   : > { %3763 = vst [vmem:[#allocation21_spill] sm:$0xff] %v2935_v11 }
 0x199   : > { %3764 = vst [vmem:[#allocation22_spill] sm:$0xff] %v2937_v23 }
 0x19c   : > { %2162 = vrot.lane.b32.xlu2 %v3765_v5, %s2301_s25 }
 0x19d   : > { %2117 = vrot.lane.b32.xlu1 %v2116_v45, %s2292_s16  ;;  %2157 = vrot.lane.b32.xlu0 %v3767_v29, %s2293_s17  ;;  %v3781_v29 = vld [vmem:[#allocation3_spill] sm:$0xff] }
 0x19e   : > { %v2950_v43 = vpop.permute.xlu2 %2002  ;;  %v2201_v60 = vpack.i.bf16 %v3781_v29, %v2782_v62  ;;  %v3784_v62 = vld [vmem:[#allocation9_spill] sm:$0xff] }
 0x19f   : > { %v2952_v40 = vpop.permute.xlu1 %1927  ;;  %v2954_v24 = vpop.permute.xlu0 %1952  ;;  %v3718_v33 = vunpack.i.h.bf16 %v2950_v43 }
 0x1a0   : > { %3768 = vst [vmem:[#allocation13_spill] sm:$0xff] %v2952_v40 }
 0x1a4   : > { %2172 = vrot.lane.b32.xlu2 %v3771_v15, %s2296_s20  ;;  %v3783_v15 = vpack.i.bf16 %v2748_v14, %v3782_v63  ;;  %v3785_v14 = vld [vmem:[#allocation10_spill] sm:$0xff] }
 0x1a5   : > { %2132 = vrot.lane.b32.xlu1 %v2121_v1, %s2298_s22  ;;  %2167 = vrot.lane.b32.xlu0 %v3774_v10, %s2297_s21  ;;  %v3786_v0 = vpack.i.bf16 %v3784_v62, %v3785_v14 }
 0x1a6   : > { %v2965_v56 = vpop.permute.xlu2 %2012 }
 0x1a7   : > { %v2967_v27 = vpop.permute.xlu1 %1932  ;;  %v2969_v19 = vpop.permute.xlu0 %1962 }
 0x1ac   : > { %2197 = vrot.lane.b32.xlu2 %v3777_v13, %s2301_s25 }
 0x1ad   : > { %2147 = vrot.lane.b32.xlu1 %v2803_v58, %s2294_s18  ;;  %2177 = vrot.lane.b32.xlu0 %v3778_v7, %s2299_s23 }
 0x1ae   : > { %v2981_v16 = vpop.permute.xlu2 %2017 }
 0x1af   : > { %v2983_v21 = vpop.permute.xlu1 %1937  ;;  %v2985_v28 = vpop.permute.xlu0 %1972 }
 0x1b0   : > { %v1940_v44 = vunpack.i.h.bf16 %v2983_v21 }
 0x1b4   : > { %2212 = vrot.lane.b32.xlu2 %v2497_v37, %s2290_s14 }
 0x1b5   : > { %2187 = vrot.lane.b32.xlu1 %v2497_v37, %s2294_s18  ;;  %2182 = vrot.lane.b32.xlu0 %v2497_v37, %s2295_s19 }
 0x1b6   : > { %v2033_v1 = vpop.permute.xlu2 %2032 }
 0x1b7   : > { %v2035_v6 = vunpack.i.h.bf16 %v2033_v1  ;;  %v2034_v61 = vunpack.i.l.bf16 %v2033_v1  ;;  %v2995_v54 = vpop.permute.xlu1 %1947  ;;  %v2997_v45 = vpop.permute.xlu0 %2007 }
 0x1b9   : > { %v3002_v5 = vsel %vm1206_vm8, %v3718_v33, %v2034_v61  ;;  %v3007_v8 = vsel %vm1206_vm8, %v3719_v46, %v2035_v6  ;;  %v2000_v6 = vunpack.i.h.bf16 %v2933_v26 }
 0x1ba   : > { %3779 = vst [vmem:[#allocation15_spill] sm:$0xff] %v3002_v5 }
 0x1bb   : > { %3780 = vst [vmem:[#allocation14_spill] sm:$0xff] %v3007_v8  ;;  %v1944_v8 = vunpack.i.l.bf16 %v2897_v48 }
 0x1bc   : > { %2217 = vrot.lane.b32.xlu2 %v3783_v15, %s2300_s24 }
 0x1bd   : > { %2192 = vrot.lane.b32.xlu1 %v2803_v58, %s2290_s14  ;;  %2202 = vrot.lane.b32.xlu0 %v2201_v60, %s2292_s16 }
 0x1be   : > { %v3018_v9 = vpop.permute.xlu2 %2052 }
 0x1bf   : > { %v3020_v55 = vpop.permute.xlu1 %1977  ;;  %v3022_v10 = vpop.permute.xlu0 %2022 }
 0x1c4   : > { %2222 = vrot.lane.b32.xlu2 %v2221_v59, %s2293_s17 }
 0x1c5   : > { %2207 = vrot.lane.b32.xlu1 %v3786_v0, %s2297_s21  ;;  %2237 = vrot.lane.b32.xlu0 %v3787_v39, %s2297_s21 }
 0x1c6   : > { %v3036_v13 = vpop.permute.xlu2 %2072 }
 0x1c7   : > { %v3038_v7 = vpop.permute.xlu1 %1982  ;;  %v2028_v1 = vpop.permute.xlu0 %2027 }
 0x1c8   : > { %v2030_v3 = vunpack.i.h.bf16 %v2028_v1  ;;  %v2029_v59 = vunpack.i.l.bf16 %v2028_v1 }
 0x1ca   : > { %v3043_v61 = vsel %vm1259_vm9, %v2000_v6, %v2029_v59  ;;  %v3046_v29 = vsel %vm1259_vm9, %v1940_v44, %v2030_v3 }
 0x1cb   : > { %3788 = vst [vmem:[#allocation17_spill] sm:$0xff] %v3043_v61  ;;  %v1979_v61 = vunpack.i.l.bf16 %v3020_v55 }
 0x1cc   : > { %3789 = vst [vmem:[#allocation16_spill] sm:$0xff] %v3046_v29  ;;  %2227 = vrot.lane.b32.xlu2 %v3790_v42, %s2301_s25  ;;  %v1924_v29 = vunpack.i.l.bf16 %v2935_v11 }
 0x1cd   : > { %2252 = vrot.lane.b32.xlu1 %v3791_v30, %s2299_s23  ;;  %2242 = vrot.lane.b32.xlu0 %v2241_v17, %s2296_s20  ;;  %v1915_v17 = vunpack.i.h.bf16 %v2922_v35 }
 0x1ce   : > { %v3060_v60 = vpop.permute.xlu2 %2077 }
 0x1cf   : > { %v3062_v63 = vpop.permute.xlu1 %1987  ;;  %v3064_v15 = vpop.permute.xlu0 %2037 }
 0x1d4   : > { %2232 = vrot.lane.b32.xlu2 %v2803_v58, %s2298_s22 }
 0x1d5   : > { %2257 = vrot.lane.b32.xlu1 %v3792_v57, %s2299_s23  ;;  %2247 = vrot.lane.b32.xlu0 %v3793_v34, %s2296_s20 }
 0x1d6   : > { %v3076_v50 = vpop.permute.xlu2 %2087 }
 0x1d7   : > { %v1993_v51 = vpop.permute.xlu1 %1992  ;;  %v3078_v31 = vpop.permute.xlu0 %2042 }
 0x1d8   : > { %v1995_v58 = vunpack.i.h.bf16 %v1993_v51  ;;  %v1994_v62 = vunpack.i.l.bf16 %v1993_v51 }
 0x1da   : > { %v3086_v36 = vsel %vm925_vm10, %v1970_v38, %v1994_v62  ;;  %v3089_v52 = vsel %vm925_vm10, %v1915_v17, %v1995_v58  ;;  %v1999_v58 = vunpack.i.l.bf16 %v2933_v26 }
 0x1dc   : > { %2262 = vrot.lane.b32.xlu2 %v2497_v37, %s2298_s22  ;;  %v1262_v46 = vsel %vm1259_vm9, %v1999_v58, %v2000_v6  ;;  %v3726_v58 = vunpack.i.h.bf16 %v3064_v15 }
 0x1dd   : > { %1654 = vperm.xlu0 %1894, %v1651_v41   ;;  %v1939_v41 = vunpack.i.l.bf16 %v2983_v21 }
 0x1de   : > { %v3093_v32 = vpop.permute.xlu2 %2122 }
 0x1df   : > { %v3095_v14 = vpop.permute.xlu1 %2047  ;;  %v3097_v0 = vpop.permute.xlu0 %2057  ;;  %v1260_v18 = vsel %vm1259_vm9, %v1939_v41, %v1940_v44 }
 0x1e6   : > { %v3099_v39 = vpop.permute.xlu2 %2137 }
 0x1e7   : > { %v3101_v1 = vpop.permute.xlu1 %2062  ;;  %v3103_v3 = vpop.permute.xlu0 %2067 }
 0x1e8   : > { %3794 = vst [vmem:[#allocation7_spill] sm:$0xff] %v3103_v3  ;;  %v3723_v42 = vunpack.i.h.bf16 %v3103_v3  ;;  %v2069_v30 = vunpack.i.l.bf16 %v3103_v3 }
 0x1ea   : > { %v1264_v33 = vsel %vm1259_vm9, %v2069_v30, %v3723_v42  ;;  %v1914_v42 = vunpack.i.l.bf16 %v2922_v35 }
 0x1ee   : > { %v3105_v59 = vpop.permute.xlu2 %2152 }
 0x1ef   : > { %3795 = vst [vmem:[#allocation8_spill] sm:$0xff] %v3105_v59  ;;  %v3724_v37 = vunpack.i.h.bf16 %v3105_v59  ;;  %v2154_v57 = vunpack.i.l.bf16 %v3105_v59  ;;  %v3111_v34 = vpop.permute.xlu1 %2082  ;;  %v3113_v51 = vpop.permute.xlu0 %2092 }
 0x1f1   : > { %v1266_v62 = vsel %vm1259_vm9, %v2154_v57, %v3724_v37  ;;  %v1910_v57 = vunpack.i.h.bf16 %v2924_v22 }
 0x1f2   : > { %1468 = vmatpush.msrb.mxu2 %v1266_v62  ;;  %v2039_v62 = vunpack.i.l.bf16 %v3064_v15 }
 0x1f4   : > { %1469 = vmatpush.msrb.mxu2 %v1264_v33  ;;  %v930_v37 = vsel %vm925_vm10, %v2039_v62, %v3726_v58  ;;  %v1919_v58 = vunpack.i.l.bf16 %v2937_v23 }
 0x1f6   : > { %v3124_v4 = vpop.permute.xlu2 %2162  ;;  %1470 = vmatpush.msrb.mxu2 %v1262_v46 }
 0x1f7   : > { %v3126_v25 = vpop.permute.xlu1 %2097  ;;  %v3128_v26 = vpop.permute.xlu0 %2107 }
 0x1f8   : > { %3796 = vst [vmem:[#allocation3_spill] sm:$0xff] %v3128_v26  ;;  %v2099_v21 = vunpack.i.l.bf16 %v3126_v25  ;;  %1471 = vmatpush.msrb.mxu2 %v1260_v18  ;;  %v1969_v18 = vunpack.i.l.bf16 %v2920_v49  ;;  %v926_v49 = vsel %vm925_vm10, %v1914_v42, %v1915_v17 }
 0x1fa   : > { %v3134_v30 = vsel %vm843_vm11, %v1910_v57, %v2099_v21  ;;  %v928_v5 = vsel %vm925_vm10, %v1969_v18, %v1970_v38  ;;  %v2044_v38 = vunpack.i.l.bf16 %v3078_v31  ;;  %v2049_v18 = vunpack.i.l.bf16 %v3095_v14 }
 0x1fb   : > { %3797 = vst [vmem:[#allocation18_spill] sm:$0xff] %v3134_v30  ;;  %v1909_v30 = vunpack.i.l.bf16 %v2924_v22  ;;  %v2274_v22 = vld [vmem:[%s3699_s8 + $0x8] sm:$0x7f] }
 0x1fd   : > { %v3187_v62 = vsel %vm843_vm11, %v1909_v30, %v1910_v57  ;;  %v3803_v30 = vunpack.i.h.bf16 %v2937_v23 }
 0x1fe   : > { %v3136_v33 = vpop.permute.xlu2 %2172 }
 0x1ff   : > { %v3138_v6 = vpop.permute.xlu1 %2102  ;;  %v3140_v46 = vpop.permute.xlu0 %2127 }
 0x200   : > { %v3725_v44 = vunpack.i.h.bf16 %v3138_v6  ;;  %v2104_v41 = vunpack.i.l.bf16 %v3138_v6 }
 0x202   : > { %v932_v21 = vsel %vm925_vm10, %v2104_v41, %v3725_v44 }
 0x203   : > { %1410 = vmatpush.msrb.mxu0 %v932_v21  ;;  %v2109_v21 = vunpack.i.l.bf16 %v3128_v26 }
 0x205   : > { %1411 = vmatpush.msrb.mxu0 %v930_v37 }
 0x206   : > { %v3162_v44 = vpop.permute.xlu2 %2197 }
 0x207   : > { %3798 = vst [vmem:[#allocation9_spill] sm:$0xff] %v3162_v44  ;;  %v3168_v37 = vpop.permute.xlu1 %2112  ;;  %v3170_v17 = vpop.permute.xlu0 %2142  ;;  %1412 = vmatpush.msrb.mxu0 %v928_v5  ;;  %v1974_v44 = vunpack.i.l.bf16 %v2985_v28  ;;  %v3799_v5 = vunpack.i.h.bf16 %v3128_v26  ;;  %v3197_v26 = vperm.slane %v2274_v22, 0 }
 0x208   : > { %v3731_v35 = vunpack.i.h.bf16 %v3168_v37  ;;  %v2114_v41 = vunpack.i.l.bf16 %v3168_v37 }
 0x209   : > { %1413 = vmatpush.msrb.mxu0 %v926_v49  ;;  %v891_v42 = vsel %vm884_vm12, %v2109_v21, %v3799_v5  ;;  %v3800_v49 = vunpack.i.h.bf16 %v2897_v48  ;;  %v3801_v21 = vunpack.i.h.bf16 %v3078_v31  ;;  %v885_v48 = vsel %vm884_vm12, %v1919_v58, %v3803_v30 }
 0x20a   : > { %v1054_v3 = vsel %vm1047_vm13, %v2114_v41, %v3731_v35  ;;  %v2004_v5 = vunpack.i.l.bf16 %v2950_v43  ;;  %v3806_v58 = vunpack.i.h.bf16 %v3020_v55  ;;  %v3807_v30 = vunpack.i.h.bf16 %v2985_v28 }
 0x20b   : > { %1414 = vmatpush.msrb.mxu0 %v891_v42  ;;  %1443 = vmatpush.msrb.mxu1 %v1054_v3  ;;  %v3192_v59 = vsel %vm1206_vm8, %v1944_v8, %v3800_v49  ;;  %v889_v41 = vsel %vm884_vm12, %v2044_v38, %v3801_v21  ;;  %v3802_v3 = vunpack.i.h.bf16 %v3095_v14  ;;  %v3804_v8 = vunpack.i.h.bf16 %v2935_v11 }
 0x20c   : > { %v1929_v49 = vunpack.i.l.bf16 %v2952_v40  ;;  %v2124_v21 = vunpack.i.l.bf16 %v3093_v32  ;;  %v2074_v35 = vunpack.i.l.bf16 %v3036_v13 }
 0x20d   : > { %v1052_v57 = vsel %vm1047_vm13, %v2049_v18, %v3802_v3  ;;  %v1048_v42 = vsel %vm1047_vm13, %v1924_v29, %v3804_v8  ;;  %1415 = vmatpush.msrb.mxu0 %v889_v41  ;;  %v1050_v29 = vsel %vm1047_vm13, %v1979_v61, %v3806_v58  ;;  %v887_v8 = vsel %vm884_vm12, %v1974_v44, %v3807_v30 }
 0x20e   : > { %1444 = vmatpush.msrb.mxu1 %v1052_v57  ;;  %v3217_v3 = vpop.permute.xlu2 %2212  ;;  %v2059_v41 = vunpack.i.l.bf16 %v3097_v0  ;;  %v2100_v57 = vunpack.i.h.bf16 %v3126_v25  ;;  %v3808_v44 = vunpack.i.h.bf16 %v3093_v32  ;;  %v2079_v25 = vunpack.i.l.bf16 %v3060_v60 }
 0x20f   : > { %3805 = vst [vmem:[#allocation10_spill] sm:$0xff] %v3217_v3  ;;  %v3229_v22 = vpop.permute.xlu1 %2117  ;;  %v3231_v18 = vpop.permute.xlu0 %2157  ;;  %1416 = vmatpush.msrb.mxu0 %v887_v8  ;;  %v1984_v3 = vunpack.i.l.bf16 %v3038_v7 }
 0x210   : > { %1445 = vmatpush.msrb.mxu1 %v1050_v29  ;;  %v2120_v61 = vunpack.i.h.bf16 %v3229_v22  ;;  %v3735_v58 = vunpack.i.l.bf16 %v3229_v22  ;;  %v2159_v30 = vunpack.i.l.bf16 %v3231_v18  ;;  %v1013_v11 = vsel %vm585_vm2, %v2124_v21, %v3808_v44 }
 0x211   : > { %1417 = vmatpush.msrb.mxu0 %v885_v48  ;;  %v3809_v38 = vunpack.i.h.bf16 %v3231_v18  ;;  %v3810_v48 = vunpack.i.h.bf16 %v2950_v43  ;;  %v3811_v29 = vunpack.i.h.bf16 %v2952_v40  ;;  %v2055_v21 = vunpack.i.h.bf16 %v3018_v9 }
 0x212   : > { %1446 = vmatpush.msrb.mxu1 %v1048_v42  ;;  %v850_v8 = vsel %vm843_vm11, %v2100_v57, %v3735_v58  ;;  %v660_v40 = vmul.f32 %v3197_v26, %v2856_v53 }
 0x213   : > { %v1213_v23 = vsel %vm1206_vm8, %v2159_v30, %v3809_v38  ;;  %1418 = vmatpush.msrb.mxu0 %v850_v8  ;;  %v1209_v42 = vsel %vm1206_vm8, %v2004_v5, %v3810_v48  ;;  %v1007_v57 = vsel %vm585_vm2, %v1929_v49, %v3811_v29  ;;  %v3812_v38 = vunpack.i.l.bf16 %v3018_v9 }
 0x214   : > { %1447 = vmatpush.msrb.mxu1 %v1013_v11  ;;  %1472 = vmatpush.msrb.mxu2 %v1213_v23  ;;  %v3813_v11 = vunpack.i.h.bf16 %v3097_v0  ;;  %v2014_v5 = vunpack.i.l.bf16 %v2965_v56  ;;  %v1934_v49 = vunpack.i.l.bf16 %v2967_v27  ;;  %v3814_v29 = vunpack.i.h.bf16 %v3036_v13 }
 0x215   : > { %v848_v44 = vsel %vm843_vm11, %v2120_v61, %v3812_v38  ;;  %v3815_v48 = vunpack.i.l.bf16 %v3140_v46  ;;  %v3816_v38 = vunpack.i.h.bf16 %v3038_v7  ;;  %v2024_v30 = vunpack.i.l.bf16 %v3022_v10 }
 0x216   : > { %v1011_v43 = vsel %vm585_vm2, %v2059_v41, %v3813_v11  ;;  %1419 = vmatpush.msrb.mxu0 %v848_v44  ;;  %v1211_v23 = vsel %vm1206_vm8, %v2074_v35, %v3814_v29  ;;  %v3273_v61 = vpop.permute.xlu2 %2217  ;;  %v2164_v29 = vunpack.i.l.bf16 %v3124_v4  ;;  %v3739_v44 = vunpack.i.h.bf16 %v3062_v63 }
 0x217   : > { %1448 = vmatpush.msrb.mxu1 %v1011_v43  ;;  %1473 = vmatpush.msrb.mxu2 %v1211_v23  ;;  %v846_v41 = vsel %vm843_vm11, %v2055_v21, %v3815_v48  ;;  %v1009_v11 = vsel %vm585_vm2, %v1984_v3, %v3816_v38  ;;  %v2064_v43 = vunpack.i.l.bf16 %v3101_v1  ;;  %v3285_v23 = vpop.permute.xlu1 %2132  ;;  %v3287_v8 = vpop.permute.xlu0 %2167 }
 0x218   : > { %1420 = vmatpush.msrb.mxu0 %v846_v41  ;;  %v3737_v21 = vunpack.i.h.bf16 %v3285_v23  ;;  %v2134_v48 = vunpack.i.l.bf16 %v3285_v23  ;;  %v3738_v3 = vunpack.i.h.bf16 %v3287_v8  ;;  %v2169_v38 = vunpack.i.l.bf16 %v3287_v8 }
 0x219   : > { %1449 = vmatpush.msrb.mxu1 %v1009_v11  ;;  %1474 = vmatpush.msrb.mxu2 %v1209_v42  ;;  %v2084_v11 = vunpack.i.l.bf16 %v3111_v34  ;;  %v1989_v42 = vunpack.i.l.bf16 %v3062_v63  ;;  %v1949_v41 = vunpack.i.l.bf16 %v2995_v54 }
 0x21a   : > { %1421 = vmatpush.msrb.mxu0 %v3187_v62  ;;  %v973_v35 = vsel %vm966_vm15, %v2134_v48, %v3737_v21  ;;  %v1372_v58 = vsel %vm1365_vm14, %v2169_v38, %v3738_v3  ;;  %v2009_v62 = vunpack.i.l.bf16 %v2997_v45  ;;  %v3820_v48 = vunpack.i.h.bf16 %v3101_v1  ;;  %v3821_v21 = vld [vmem:[#allocation12_spill] sm:$0xff] }
 0x21b   : > { %1450 = vmatpush.msrb.mxu1 %v1007_v57  ;;  %1475 = vmatpush.msrb.mxu2 %v3192_v59  ;;  %v3819_v59 = vunpack.i.h.bf16 %v3124_v4  ;;  %v662_v3 = vmul.f32 %v3197_v26, %v3821_v21  ;;  %v3825_v21 = vunpack.i.l.bf16 %v2954_v24 }
 0x21c   : > { %1843 = vmatpush.msk.msrb.mxu0 %vm3294_vm3, %v2893_v47  ;;  %1505 = vmatpush.msrb.mxu3 %v1372_v58  ;;  %v971_v38 = vsel %vm966_vm15, %v2064_v43, %v3820_v48  ;;  %v3822_v47 = vunpack.i.h.bf16 %v3060_v60  ;;  %v3823_v58 = vunpack.i.h.bf16 %v3111_v34  ;;  %v3824_v43 = vunpack.i.h.bf16 %v2954_v24 }
 0x21d   : > { %1451 = vmatpush.msrb.mxu1 %v973_v35  ;;  %v1160_v57 = vsel %vm1153_vm1, %v2164_v29, %v3819_v59 }
 0x21e   : > { %1476 = vmatpush.msrb.mxu2 %v1160_v57  ;;  %1845 = vmatpush.msk.msrb.mxu0 %vm3294_vm3, %v2579_v2  ;;  %v1158_v35 = vsel %vm1153_vm1, %v2079_v25, %v3822_v47  ;;  %v1370_v29 = vsel %vm1365_vm14, %v2084_v11, %v3823_v58  ;;  %v1366_v59 = vsel %vm1365_vm14, %v3825_v21, %v3824_v43  ;;  %v3342_v53 = vpop.permute.xlu2 %2222  ;;  %v3826_v25 = vunpack.i.h.bf16 %v2965_v56 }
 0x21f   : > { %1452 = vmatpush.msrb.mxu1 %v971_v38  ;;  %1506 = vmatpush.msrb.mxu3 %v1370_v29  ;;  %v969_v2 = vsel %vm966_vm15, %v1989_v42, %v3739_v44  ;;  %v3827_v11 = vunpack.i.h.bf16 %v2967_v27  ;;  %v2174_v47 = vunpack.i.l.bf16 %v3136_v33  ;;  %v3357_v58 = vpop.permute.xlu0 %2177  ;;  %v3828_v29 = vld [vmem:[#allocation6_spill] sm:$0xff]  ;;  %v2140_v21 = vunpack.i.h.bf16 %v3099_v39 }
 0x220   : > { %1477 = vmatpush.msrb.mxu2 %v1158_v35  ;;  %v1368_v57 = vsel %vm1365_vm14, %v2014_v5, %v3826_v25  ;;  %v3355_v35 = vpop.permute.xlu1 %2147  ;;  %1847 = vmatpush.msk.msrb.mxu0 %vm3294_vm3, %v3828_v29  ;;  %v3829_v5 = vunpack.i.h.bf16 %v2997_v45  ;;  %v2139_v25 = vunpack.i.l.bf16 %v3099_v39  ;;  %v2179_v44 = vunpack.i.l.bf16 %v3357_v58  ;;  %v3831_v38 = vld [vmem:[#allocation2_spill] sm:$0xff] }
 0x221   : > { %v967_v48 = vsel %vm966_vm15, %v1934_v49, %v3827_v11  ;;  %1453 = vmatpush.msrb.mxu1 %v969_v2  ;;  %v3830_v49 = vunpack.i.h.bf16 %v2995_v54  ;;  %v2180_v11 = vunpack.i.h.bf16 %v3357_v58  ;;  %1507 = vmatpush.msrb.mxu3 %v1368_v57  ;;  %v2090_v2 = vunpack.i.h.bf16 %v3076_v50 }
 0x222   : > { %v1156_v42 = vsel %vm1153_vm1, %v2009_v62, %v3829_v5  ;;  %v2089_v29 = vunpack.i.l.bf16 %v3076_v50  ;;  %v2094_v5 = vunpack.i.l.bf16 %v3113_v51  ;;  %1849 = vmatpush.msk.msrb.mxu0 %vm3294_vm3, %v3831_v38  ;;  %v2020_v39 = vunpack.i.h.bf16 %v2981_v16 }
 0x223   : > { %v1154_v43 = vsel %vm1153_vm1, %v1949_v41, %v3830_v49  ;;  %1478 = vmatpush.msrb.mxu2 %v1156_v42  ;;  %1454 = vmatpush.msrb.mxu1 %v967_v48  ;;  %v3832_v41 = vunpack.i.h.bf16 %v3138_v6  ;;  %v1319_v42 = vsel %vm1312_vm4, %v2179_v44, %v2180_v11  ;;  %v2019_v49 = vunpack.i.l.bf16 %v2981_v16 }
 0x224   : > { %1508 = vmatpush.msrb.mxu3 %v1366_v59  ;;  %v2025_v62 = vunpack.i.h.bf16 %v3022_v10  ;;  %v3833_v48 = vunpack.i.h.bf16 %v3136_v33  ;;  %v1960_v6 = vunpack.i.h.bf16 %v2912_v20  ;;  %v1959_v38 = vunpack.i.l.bf16 %v2912_v20 }
 0x225   : > { %1479 = vmatpush.msrb.mxu2 %v1154_v43  ;;  %v933_v57 = vsel %vm925_vm10, %v3832_v41, %v2139_v25  ;;  %1555 = vmatpush.msra.mxu1 %v662_v3  ;;  %v3834_v44 = vunpack.i.h.bf16 %v3064_v15  ;;  %v658_v25 = vmul.f32 %v3197_v26, %v2605_v12  ;;  %v1965_v41 = vunpack.i.h.bf16 %v2969_v19  ;;  %v3836_v12 = vld [vmem:[#allocation5_spill] sm:$0xff] }
 0x226   : > { %1526 = vmatpush.msra.mxu0 %v933_v57  ;;  %v1107_v59 = vsel %vm1100_vm5, %v2174_v47, %v3833_v48  ;;  %1509 = vmatpush.msrb.mxu3 %v1319_v42  ;;  %v1964_v3 = vunpack.i.l.bf16 %v2969_v19  ;;  %v1105_v47 = vsel %vm1100_vm5, %v2089_v29, %v2090_v2  ;;  %v3835_v57 = vunpack.i.h.bf16 %v3113_v51 }
 0x227   : > { %1480 = vmatpush.msrb.mxu2 %v1107_v59  ;;  %v931_v43 = vsel %vm925_vm10, %v3834_v44, %v2140_v21  ;;  %1556 = vmatpush.msra.mxu1 %v660_v40  ;;  %v2144_v15 = vunpack.i.l.bf16 %v3170_v17  ;;  %v3408_v21 = vpop.permute.xlu2 %2227  ;;  %v656_v48 = vmul.f32 %v3197_v26, %v3836_v12  ;;  %v2219_v59 = vunpack.i.l.bf16 %v3273_v61  ;;  %v2183_v44 = vpop.permute.xlu0 %2182  ;;  %v3425_v26 = vld [vmem:[%s3696_s5 + $0x10] sm:$0xff]  ;;  %v3840_v12 = vld [vmem:[#allocation8_spill] sm:$0xff] }
 0x228   : > { %1527 = vmatpush.msra.mxu0 %v931_v43  ;;  %v1317_v42 = vsel %vm1312_vm4, %v2094_v5, %v3835_v57  ;;  %v2149_v40 = vunpack.i.l.bf16 %v3355_v35  ;;  %v2188_v29 = vpop.permute.xlu1 %2187  ;;  %v1103_v5 = vsel %vm1100_vm5, %v2019_v49, %v2020_v39  ;;  %v1315_v43 = vsel %vm1312_vm4, %v2024_v30, %v2025_v62  ;;  %v3837_v30 = vld [vmem:[#allocation3_spill] sm:$0xff] }
 0x229   : > { %1481 = vmatpush.msrb.mxu2 %v1105_v47  ;;  %1510 = vmatpush.msrb.mxu3 %v1317_v42  ;;  %v2145_v47 = vunpack.i.h.bf16 %v3170_v17  ;;  %v1101_v49 = vsel %vm1100_vm5, %v1959_v38, %v1960_v6  ;;  %v1313_v17 = vsel %vm1312_vm4, %v1964_v3, %v1965_v41  ;;  %v3838_v57 = vunpack.i.h.bf16 %v3837_v30 }
 0x22a   : > { %1528 = vmatpush.msra.mxu0 %v3086_v36  ;;  %1557 = vmatpush.msra.mxu1 %v658_v25  ;;  %v2220_v36 = vunpack.i.h.bf16 %v3273_v61  ;;  %v2150_v25 = vunpack.i.h.bf16 %v3355_v35  ;;  %v3442_v61 = vld [vmem:[%s3696_s5 + $0x18] sm:$0xff]  ;;  %v2184_v35 = vunpack.i.l.bf16 %v2183_v44  ;;  %v3839_v38 = vunpack.i.h.bf16 %v3168_v37  ;;  %v3462_v37 = vld [vmem:[%s3696_s5 + $0x8] sm:$0xff] }
 0x22b   : > { %1482 = vmatpush.msrb.mxu2 %v1103_v5  ;;  %1511 = vmatpush.msrb.mxu3 %v1315_v43  ;;  %v892_v42 = vsel %vm884_vm12, %v3838_v57, %v2144_v15  ;;  %v3842_v15 = vunpack.i.h.bf16 %v3078_v31  ;;  %v3843_v31 = vunpack.i.h.bf16 %v3095_v14 }
 0x22c   : > { %1529 = vmatpush.msra.mxu0 %v3089_v52  ;;  %1558 = vmatpush.msra.mxu1 %v656_v48  ;;  %v2189_v52 = vunpack.i.l.bf16 %v2188_v29  ;;  %v1055_v3 = vsel %vm1047_vm13, %v3839_v38, %v2149_v40  ;;  %v3841_v48 = vunpack.i.h.bf16 %v3840_v12  ;;  %v2190_v40 = vunpack.i.h.bf16 %v2188_v29 }
 0x22d   : > { %1483 = vmatpush.msrb.mxu2 %v1101_v49  ;;  %1512 = vmatpush.msrb.mxu3 %v1313_v17  ;;  %v890_v43 = vsel %vm884_vm12, %v3842_v15, %v2145_v47  ;;  %v3457_v49 = vld [vmem:[%s3696_s5] sm:$0xff]  ;;  %v2185_v17 = vunpack.i.h.bf16 %v2183_v44  ;;  %v3844_v47 = vld [vmem:[#allocation7_spill] sm:$0xff]  ;;  %v3846_v29 = vunpack.i.h.bf16 %v2985_v28  ;;  %v3849_v28 = vld [vmem:[#allocation22_spill] sm:$0xff] }
 0x22e   : > { %1484 = vmatmul.f32.vlgmr.msrb.gmra.mxu2 %v3425_v26  ;;  %1530 = vmatpush.msra.mxu0 %v892_v42  ;;  %v1267_v5 = vsel %vm1259_vm9, %v3841_v48, %v2219_v59  ;;  %v1053_v59 = vsel %vm1047_vm13, %v3843_v31, %v2150_v25  ;;  %v3845_v30 = vunpack.i.h.bf16 %v3844_v47  ;;  %v3847_v42 = vunpack.i.h.bf16 %v3020_v55 }
 0x22f   : > { %1559 = vmatpush.msra.mxu1 %v1055_v3  ;;  %1584 = vmatpush.msra.mxu2 %v1267_v5  ;;  %v888_v44 = vsel %vm884_vm12, %v3846_v29, %v2184_v35  ;;  %v2203_v25 = vpop.permute.xlu0 %2202  ;;  %v2224_v3 = vunpack.i.l.bf16 %v3342_v53  ;;  %v2130_v48 = vunpack.i.h.bf16 %v3140_v46  ;;  %v3848_v5 = vld [vmem:[#allocation17_spill] sm:$0xff]  ;;  %v3483_v15 = vpop.permute.xlu2 %2232  ;;  %v3850_v35 = vunpack.i.h.bf16 %v3849_v28 }
 0x230   : > { %1850 = vmatmul.msk.f32.vlgmr.msrb.gmra.mxu3 %vm966_vm15, %v3442_v61  ;;  %1531 = vmatpush.msra.mxu0 %v890_v43  ;;  %v1265_v57 = vsel %vm1259_vm9, %v3845_v30, %v2220_v36  ;;  %v1051_v14 = vsel %vm1047_vm13, %v3847_v42, %v2189_v52  ;;  %v2193_v38 = vpop.permute.xlu1 %2192  ;;  %v2204_v12 = vunpack.i.l.bf16 %v2203_v25  ;;  %v3851_v43 = vld [vmem:[#allocation21_spill] sm:$0xff]  ;;  %v2225_v47 = vunpack.i.h.bf16 %v3342_v53  ;;  %v3507_v42 = vld [vmem:[%s3696_s5 + $0x38] sm:$0xff] }
 0x231   : > { %1560 = vmatpush.msra.mxu1 %v1053_v59  ;;  %1585 = vmatpush.msra.mxu2 %v1265_v57  ;;  %v2194_v36 = vunpack.i.l.bf16 %v2193_v38  ;;  %v886_v55 = vsel %vm884_vm12, %v3850_v35, %v2185_v17  ;;  %v3852_v52 = vunpack.i.h.bf16 %v3851_v43  ;;  %v3494_v59 = vld [vmem:[%s3696_s5 + $0x30] sm:$0xff]  ;;  %v2195_v30 = vunpack.i.h.bf16 %v2193_v38 }
 0x232   : > { %1426 = vmatmul.f32.vlgmr.msrb.gmra.mxu0 %v3457_v49  ;;  %1455 = vmatmul.f32.vlgmr.msrb.gmra.mxu1 %v3462_v37  ;;  %v3853_v57 = vunpack.i.h.bf16 %v3093_v32  ;;  %v3855_v17 = vunpack.i.l.bf16 %v3229_v22  ;;  %v3856_v53 = vunpack.i.l.bf16 %v3018_v9  ;;  %v2205_v38 = vunpack.i.h.bf16 %v2203_v25  ;;  %v3858_v22 = vld [vmem:[#allocation10_spill] sm:$0xff] }
 0x233   : > { %1532 = vmatpush.msra.mxu0 %v888_v44  ;;  %1561 = vmatpush.msra.mxu1 %v1051_v14  ;;  %v1049_v31 = vsel %vm1047_vm13, %v3852_v52, %v2190_v40  ;;  %v3854_v44 = vld [vmem:[#allocation16_spill] sm:$0xff]  ;;  %v3857_v32 = vunpack.i.h.bf16 %v3231_v18  ;;  %v3525_v9 = vld [vmem:[%s3696_s5 + $0x28] sm:$0xff]  ;;  %v3859_v18 = vunpack.i.h.bf16 %v3036_v13  ;;  %v2215_v28 = vunpack.i.h.bf16 %v3858_v22 }
 0x234   : > { %1586 = vmatpush.msra.mxu2 %v3848_v5  ;;  %v1014_v29 = vsel %vm585_vm2, %v3853_v57, %v2194_v36  ;;  %v851_v40 = vsel %vm843_vm11, %v3855_v17, %v2130_v48  ;;  %v849_v14 = vsel %vm843_vm11, %v3856_v53, %v2204_v12  ;;  %v2214_v5 = vunpack.i.l.bf16 %v3858_v22  ;;  %v3520_v48 = vld [vmem:[%s3696_s5 + $0x20] sm:$0xff]  ;;  %v3865_v53 = vld [vmem:[#allocation14_spill] sm:$0xff] }
 0x235   : > { %1533 = vmatpush.msra.mxu0 %v886_v55  ;;  %1562 = vmatpush.msra.mxu1 %v1049_v31  ;;  %v1214_v36 = vsel %vm1206_vm8, %v3857_v32, %v2224_v3  ;;  %v1212_v25 = vsel %vm1206_vm8, %v3859_v18, %v2225_v47  ;;  %v3860_v3 = vunpack.i.h.bf16 %v3097_v0  ;;  %v2229_v43 = vunpack.i.l.bf16 %v3408_v21  ;;  %v3862_v47 = vld [vmem:[#allocation15_spill] sm:$0xff]  ;;  %v3870_v18 = vld [vmem:[#allocation20_spill] sm:$0xff] }
 0x236   : > { %1587 = vmatpush.msra.mxu2 %v3854_v44  ;;  %v3861_v13 = vunpack.i.l.bf16 %v3140_v46  ;;  %v2234_v31 = vunpack.i.l.bf16 %v3483_v15  ;;  %v2230_v46 = vunpack.i.h.bf16 %v3408_v21  ;;  %v2235_v44 = vunpack.i.h.bf16 %v3483_v15 }
 0x237   : > { %1487 = vmatmul.f32.gmra.mxu2 %v3494_v59  ;;  %1534 = vmatpush.msra.mxu0 %v851_v40  ;;  %v1012_v12 = vsel %vm585_vm2, %v3860_v3, %v2195_v30  ;;  %v2238_v55 = vpop.permute.xlu0 %2237  ;;  %v3863_v30 = vunpack.i.h.bf16 %v3038_v7  ;;  %v2263_v17 = vpop.permute.xlu2 %2262  ;;  %v3864_v40 = vld [vmem:[#allocation18_spill] sm:$0xff]  ;;  %v3868_v32 = vunpack.i.h.bf16 %v3287_v8  ;;  %v3869_v21 = vunpack.i.h.bf16 %v3124_v4  ;;  %v3872_v3 = vld [vmem:[#allocation9_spill] sm:$0xff] }
 0x238   : > { %1588 = vmatpush.msra.mxu2 %v1214_v36  ;;  %1563 = vmatpush.msra.mxu1 %v1014_v29  ;;  %v3536_v35 = vpop.permute.xlu1 %2207  ;;  %v847_v52 = vsel %vm843_vm11, %v3861_v13, %v2205_v38  ;;  %v2239_v0 = vunpack.i.l.bf16 %v2238_v55  ;;  %v3552_v29 = vld [vmem:[%s3696_s5 + $0x50] sm:$0xff]  ;;  %v2240_v22 = vunpack.i.h.bf16 %v2238_v55  ;;  %v3871_v8 = vunpack.i.h.bf16 %v3285_v23  ;;  %v3581_v4 = vld [vmem:[%s3696_s5 + $0x40] sm:$0xff] }
 0x239   : > { %1851 = vmatmul.msk.f32.gmra.mxu3 %vm966_vm15, %v3507_v42  ;;  %1535 = vmatpush.msra.mxu0 %v849_v14  ;;  %v1010_v57 = vsel %vm585_vm2, %v3863_v30, %v2214_v5  ;;  %v3866_v14 = vld [vmem:[#allocation13_spill] sm:$0xff]  ;;  %v1161_v15 = vsel %vm1153_vm1, %v3869_v21, %v2229_v43  ;;  %v3571_v5 = vld [vmem:[%s3696_s5 + $0x58] sm:$0xff]  ;;  %v2209_v55 = vunpack.i.l.bf16 %v3536_v35  ;;  %v3873_v43 = vld [vmem:[#allocation19_spill] sm:$0xff]  ;;  %v3874_v23 = vunpack.i.h.bf16 %v3060_v60 }
 0x23a   : > { %1589 = vmatpush.msra.mxu2 %v1212_v25  ;;  %1564 = vmatpush.msra.mxu1 %v1012_v12  ;;  %v3867_v38 = vunpack.i.h.bf16 %v3866_v14  ;;  %v1373_v36 = vsel %vm1365_vm14, %v3868_v32, %v2239_v0  ;;  %v974_v25 = vsel %vm966_vm15, %v3871_v8, %v2234_v31  ;;  %v2199_v12 = vunpack.i.l.bf16 %v3872_v3  ;;  %v3596_v31 = vld [vmem:[%s3696_s5 + $0x48] sm:$0xff]  ;;  %v3877_v14 = vld [vmem:[#allocation11_spill] sm:$0xff]  ;;  %v3881_v21 = vld [vmem:[#allocation4_spill] sm:$0xff] }
 0x23b   : > { %1429 = vmatmul.f32.gmra.mxu0 %v3520_v48  ;;  %1458 = vmatmul.f32.gmra.mxu1 %v3525_v9  ;;  %v1159_v13 = vsel %vm1153_vm1, %v3874_v23, %v2230_v46  ;;  %v3876_v60 = vunpack.i.h.bf16 %v3111_v34 }
 0x23c   : > { %1536 = vmatpush.msra.mxu0 %v847_v52  ;;  %1590 = vmatpush.msra.mxu2 %v3862_v47  ;;  %v1008_v7 = vsel %vm585_vm2, %v3867_v38, %v2215_v28  ;;  %v2264_v28 = vunpack.i.l.bf16 %v2263_v17  ;;  %v3875_v52 = vunpack.i.h.bf16 %v3101_v1  ;;  %v2210_v1 = vunpack.i.h.bf16 %v3536_v35 }
 0x23d   : > { %1565 = vmatpush.msra.mxu1 %v1010_v57  ;;  %1621 = vmatpush.msra.mxu3 %v1373_v36  ;;  %v2200_v57 = vunpack.i.h.bf16 %v3872_v3  ;;  %v1371_v46 = vsel %vm1365_vm14, %v3876_v60, %v2240_v22  ;;  %v3878_v38 = vunpack.i.h.bf16 %v2997_v45  ;;  %v3880_v35 = vunpack.i.h.bf16 %v2965_v56  ;;  %v1396_v36 = vld [vmem:[%s3696_s5 + $0x70] sm:$0xff] }
 0x23e   : > { %1537 = vmatpush.msra.mxu0 %v3864_v40  ;;  %1591 = vmatpush.msra.mxu2 %v3865_v53  ;;  %v972_v0 = vsel %vm966_vm15, %v3875_v52, %v2235_v44  ;;  %v2265_v40 = vunpack.i.h.bf16 %v2263_v17  ;;  %v3882_v45 = vunpack.i.h.bf16 %v2995_v54  ;;  %v3884_v56 = vunpack.i.h.bf16 %v3136_v33  ;;  %v1394_v33 = vld [vmem:[%s3696_s5 + $0x60] sm:$0xff] }
 0x23f   : > { %1566 = vmatpush.msra.mxu1 %v1008_v7  ;;  %1490 = vmatmul.f32.gmra.mxu2 %v3552_v29  ;;  %v2243_v30 = vpop.permute.xlu0 %2242  ;;  %v1157_v17 = vsel %vm1153_vm1, %v3878_v38, %v2199_v12  ;;  %v3879_v7 = vunpack.i.h.bf16 %v3062_v63  ;;  %v1369_v32 = vsel %vm1365_vm14, %v3880_v35, %v2209_v55  ;;  %v3885_v12 = vunpack.i.h.bf16 %v2954_v24 }
 0x240   : > { %1538 = vmatpush.msra.mxu0 %v3870_v18  ;;  %1592 = vmatpush.msra.mxu2 %v1161_v15  ;;  %v2253_v47 = vpop.permute.xlu1 %2252  ;;  %v2244_v53 = vunpack.i.l.bf16 %v2243_v30  ;;  %v2245_v22 = vunpack.i.h.bf16 %v2243_v30  ;;  %v1155_v63 = vsel %vm1153_vm1, %v3882_v45, %v2200_v57  ;;  %v3883_v15 = vunpack.i.h.bf16 %v2967_v27 }
 0x241   : > { %1567 = vmatpush.msra.mxu1 %v974_v25  ;;  %1852 = vmatmul.msk.f32.gmra.mxu3 %vm966_vm15, %v3571_v5  ;;  %v2254_v44 = vunpack.i.l.bf16 %v2253_v47  ;;  %v970_v34 = vsel %vm966_vm15, %v3879_v7, %v2264_v28  ;;  %v1397_v25 = vld [vmem:[%s3696_s5 + $0x78] sm:$0xff]  ;;  %v2255_v3 = vunpack.i.h.bf16 %v2253_v47  ;;  %v1367_v54 = vsel %vm1365_vm14, %v3885_v12, %v2210_v1  ;;  %v1395_v28 = vld [vmem:[%s3696_s5 + $0x68] sm:$0xff] }
 0x242   : > { %1539 = vmatpush.msra.mxu0 %v3873_v43  ;;  %1593 = vmatpush.msra.mxu2 %v1159_v13  ;;  %v968_v18 = vsel %vm966_vm15, %v3883_v15, %v2265_v40  ;;  %v1108_v8 = vsel %vm1100_vm5, %v3884_v56, %v2244_v53  ;;  %v1106_v58 = vsel %vm1100_vm5, %v2090_v2, %v2245_v22  ;;  %v3886_v13 = vunpack.i.h.bf16 %v3113_v51  ;;  %v1650_v22 = vld [vmem:[%s3697_s6] sm:$0xf] }
 0x243   : > { %1568 = vmatpush.msra.mxu1 %v972_v0  ;;  %1622 = vmatpush.msra.mxu3 %v1371_v46  ;;  %v1320_v27 = vsel %vm1312_vm4, %v2180_v11, %v2254_v44 }
 0x244   : > { %1432 = vmatmul.f32.gmra.mxu0 %v3581_v4  ;;  %1461 = vmatmul.f32.gmra.mxu1 %v3596_v31  ;;  %v1318_v52 = vsel %vm1312_vm4, %v3886_v13, %v2255_v3 }
 0x245   : > { %1540 = vmatpush.msra.mxu0 %v3877_v14  ;;  %1594 = vmatpush.msra.mxu2 %v1157_v17 }
 0x246   : > { %1569 = vmatpush.msra.mxu1 %v970_v34  ;;  %1623 = vmatpush.msra.mxu3 %v1369_v32 }
 0x247   : > { %1541 = vmatpush.msra.mxu0 %v3881_v21  ;;  %1595 = vmatpush.msra.mxu2 %v1155_v63  ;;  %v2248_v55 = vpop.permute.xlu0 %2247 }
 0x248   : > { %1570 = vmatpush.msra.mxu1 %v968_v18  ;;  %1624 = vmatpush.msra.mxu3 %v1367_v54  ;;  %v2258_v24 = vpop.permute.xlu1 %2257  ;;  %v2250_v43 = vunpack.i.h.bf16 %v2248_v55  ;;  %v2249_v23 = vunpack.i.l.bf16 %v2248_v55 }
 0x249   : > { %1493 = vmatmul.f32.gmra.mxu2 %v1396_v36  ;;  %1853 = vmatmul.msk.f32.gmra.mxu3 %vm966_vm15, %v1397_v25  ;;  %v2259_v11 = vunpack.i.l.bf16 %v2258_v24  ;;  %v2260_v0 = vunpack.i.h.bf16 %v2258_v24 }
 0x24a   : > { %1596 = vmatpush.msra.mxu2 %v1108_v8  ;;  %1625 = vmatpush.msra.mxu3 %v1320_v27  ;;  %v1104_v47 = vsel %vm1100_vm5, %v2020_v39, %v2249_v23  ;;  %v1102_v51 = vsel %vm1100_vm5, %v1960_v6, %v2250_v43 }
 0x24b   : > { %v1316_v50 = vsel %vm1312_vm4, %v2025_v62, %v2259_v11  ;;  %v1314_v2 = vsel %vm1312_vm4, %v1965_v41, %v2260_v0 }
 0x24c   : > { %1597 = vmatpush.msra.mxu2 %v1106_v58  ;;  %1435 = vmatmul.f32.gmra.mxu0 %v1394_v33 }
 0x24d   : > { %1626 = vmatpush.msra.mxu3 %v1318_v52  ;;  %1464 = vmatmul.f32.gmra.mxu1 %v1395_v28 }
 0x24e   : > { %1598 = vmatpush.msra.mxu2 %v1104_v47 }
 0x24f   : > { %1627 = vmatpush.msra.mxu3 %v1316_v50 }
 0x250   : > { %1599 = vmatpush.msra.mxu2 %v1102_v51 }
 0x251   : > { %1628 = vmatpush.msra.mxu3 %v1314_v2  ;;  %1600 = vmatmul.f32.vlgmr.msra.gmra.mxu2 %v3425_v26 }
 0x252   : > { %1854 = vmatmul.msk.f32.vlgmr.msra.gmra.mxu3 %vm966_vm15, %v3442_v61 }
 0x254   : > { %1542 = vmatmul.f32.vlgmr.msra.gmra.mxu0 %v3457_v49 }
 0x255   : > { %1571 = vmatmul.f32.vlgmr.msra.gmra.mxu1 %v3462_v37 }
 0x259   : > { %1603 = vmatmul.f32.gmra.mxu2 %v3494_v59 }
 0x25a   : > { %1855 = vmatmul.msk.f32.gmra.mxu3 %vm966_vm15, %v3507_v42 }
 0x25c   : > { %1545 = vmatmul.f32.gmra.mxu0 %v3520_v48 }
 0x25d   : > { %1574 = vmatmul.f32.gmra.mxu1 %v3525_v9 }
 0x261   : > { %1606 = vmatmul.f32.gmra.mxu2 %v3552_v29 }
 0x262   : > { %1856 = vmatmul.msk.f32.gmra.mxu3 %vm966_vm15, %v3571_v5 }
 0x264   : > { %1548 = vmatmul.f32.gmra.mxu0 %v3581_v4 }
 0x265   : > { %1577 = vmatmul.f32.gmra.mxu1 %v3596_v31 }
 0x269   : > { %1609 = vmatmul.f32.gmra.mxu2 %v1396_v36 }
 0x26a   : > { %1857 = vmatmul.msk.f32.gmra.mxu3 %vm966_vm15, %v1397_v25 }
 0x26c   : > { %1551 = vmatmul.f32.gmra.mxu0 %v1394_v33 }
 0x26d   : > { %1580 = vmatmul.f32.gmra.mxu1 %v1395_v28 }
 0x2af   : > { %v1427_v20 = vpop.f32.mrf.mxu0  ;;  %v1456_v19 = vpop.f32.mrf.mxu1 }
 0x2b0   : > { %v1457_v29 = vadd.f32 %v1456_v19, %v1427_v20 }
 0x2b1   : > { %v1485_v16 = vpop.f32.mrf.mxu2 }
 0x2b2   : > { %v1486_v60 = vadd.f32 %v1485_v16, %v1457_v29  ;;  %v1655_v16 = vpop.permute.xlu0 %1654 }
 0x2b3   : > { %v1514_v10 = vpop.f32.mrf.mxu3 }
 0x2b4   : > { %v1515_v17 = vadd.f32 %v1514_v10, %v1486_v60 }
 0x2b6   : > { %v1642_v36 = vmax.f32 %v1515_v17, 0.0 }
 0x2b8   : > { %v1430_v62 = vpop.f32.mrf.mxu0  ;;  %v1459_v39 = vpop.f32.mrf.mxu1 }
 0x2b9   : > { %v1460_v42 = vadd.f32 %v1459_v39, %v1430_v62 }
 0x2ba   : > { %v1488_v6 = vpop.f32.mrf.mxu2 }
 0x2bb   : > { %v1489_v30 = vadd.f32 %v1488_v6, %v1460_v42 }
 0x2bc   : > { %v1517_v41 = vpop.f32.mrf.mxu3 }
 0x2bd   : > { %v1518_v1 = vadd.f32 %v1517_v41, %v1489_v30 }
 0x2bf   : > { %v1644_v35 = vmax.f32 %v1518_v1, 0.0 }
 0x2c1   : > { %v1433_v26 = vpop.f32.mrf.mxu0  ;;  %v1462_v61 = vpop.f32.mrf.mxu1 }
 0x2c2   : > { %v1491_v49 = vpop.f32.mrf.mxu2  ;;  %v1463_v59 = vadd.f32 %v1462_v61, %v1433_v26 }
 0x2c4   : > { %v1520_v37 = vpop.f32.mrf.mxu3  ;;  %v1492_v5 = vadd.f32 %v1491_v49, %v1463_v59 }
 0x2c6   : > { %v1521_v46 = vadd.f32 %v1520_v37, %v1492_v5 }
 0x2c8   : > { %v1646_v7 = vmax.f32 %v1521_v46, 0.0 }
 0x2c9   : > { %v1436_v48 = vpop.f32.mrf.mxu0 }
 0x2ca   : > { %v1465_v9 = vpop.f32.mrf.mxu1 }
 0x2cb   : > { %v1466_v4 = vadd.f32 %v1465_v9, %v1436_v48 }
 0x2cc   : > { %v1494_v31 = vpop.f32.mrf.mxu2  ;;  %v1523_v40 = vpop.f32.mrf.mxu3 }
 0x2cd   : > { %v1495_v57 = vadd.f32 %v1494_v31, %v1466_v4 }
 0x2cf   : > { %v1524_v53 = vadd.f32 %v1523_v40, %v1495_v57 }
 0x2d1   : > { %v1648_v44 = vmax.f32 %v1524_v53, 0.0  ;;  %v1543_v14 = vpop.f32.mrf.mxu0 }
 0x2d2   : > { %v1572_v38 = vpop.f32.mrf.mxu1 }
 0x2d3   : > { %1672 = vmatpush.msrb.mxu0 %v1648_v44  ;;  %v1573_v33 = vadd.f32 %v1572_v38, %v1543_v14 }
 0x2d4   : > { %v1601_v34 = vpop.f32.mrf.mxu2 }
 0x2d5   : > { %1673 = vmatpush.msrb.mxu0 %v1646_v7  ;;  %v1630_v32 = vpop.f32.mrf.mxu3  ;;  %v1602_v23 = vadd.f32 %v1601_v34, %v1573_v33 }
 0x2d7   : > { %1674 = vmatpush.msrb.mxu0 %v1644_v35  ;;  %v1631_v50 = vadd.f32 %v1630_v32, %v1602_v23 }
 0x2d9   : > { %1675 = vmatpush.msrb.mxu0 %v1642_v36  ;;  %v1546_v21 = vpop.f32.mrf.mxu0  ;;  %v1643_v20 = vmax.f32 %v1631_v50, 0.0 }
 0x2da   : > { %1858 = vmatmul.msk.f32.vlgmr.msrb.gmra.mxu0 %vm1047_vm13, %v1650_v22  ;;  %v1575_v45 = vpop.f32.mrf.mxu1 }
 0x2db   : > { %v1576_v12 = vadd.f32 %v1575_v45, %v1546_v21 }
 0x2dc   : > { %v1604_v63 = vpop.f32.mrf.mxu2 }
 0x2dd   : > { %v1633_v15 = vpop.f32.mrf.mxu3  ;;  %v1605_v58 = vadd.f32 %v1604_v63, %v1576_v12 }
 0x2df   : > { %v1634_v0 = vadd.f32 %v1633_v15, %v1605_v58 }
 0x2e1   : > { %v1549_v18 = vpop.f32.mrf.mxu0  ;;  %v1645_v2 = vmax.f32 %v1634_v0, 0.0 }
 0x2e2   : > { %v1578_v56 = vpop.f32.mrf.mxu1 }
 0x2e3   : > { %v1579_v3 = vadd.f32 %v1578_v56, %v1549_v18 }
 0x2e4   : > { %v1607_v8 = vpop.f32.mrf.mxu2 }
 0x2e5   : > { %v1636_v25 = vpop.f32.mrf.mxu3  ;;  %v1608_v28 = vadd.f32 %v1607_v8, %v1579_v3 }
 0x2e7   : > { %v1637_v13 = vadd.f32 %v1636_v25, %v1608_v28 }
 0x2e9   : > { %v1552_v54 = vpop.f32.mrf.mxu0  ;;  %v1647_v51 = vmax.f32 %v1637_v13, 0.0 }
 0x2ea   : > { %v1581_v27 = vpop.f32.mrf.mxu1 }
 0x2eb   : > { %v1582_v24 = vadd.f32 %v1581_v27, %v1552_v54 }
 0x2ec   : > { %v1610_v55 = vpop.f32.mrf.mxu2 }
 0x2ed   : > { %v1611_v11 = vadd.f32 %v1610_v55, %v1582_v24  ;;  %v1639_v43 = vpop.f32.mrf.mxu3 }
 0x2ef   : > { %v1640_v52 = vadd.f32 %v1639_v43, %v1611_v11 }
 0x2f1   : > { %v1649_v47 = vmax.f32 %v1640_v52, 0.0 }
 0x2f3   : > { %1692 = vmatpush.msrb.mxu1 %v1649_v47 }
 0x2f5   : > { %1693 = vmatpush.msrb.mxu1 %v1647_v51 }
 0x2f7   : > { %1694 = vmatpush.msrb.mxu1 %v1645_v2 }
 0x2f9   : > { %1695 = vmatpush.msrb.mxu1 %v1643_v20 }
 0x2fa   : > { %1859 = vmatmul.msk.f32.vlgmr.msrb.gmra.mxu1 %vm1047_vm13, %v1650_v22 }
 0x357   : > { %v1677_v19 = vpop.f32.mrf.mxu0 }
 0x358   : > { %v1678_v10 = vadd.f32 %v1677_v19, %v1655_v16 }
 0x35a   : > { %v1860_v62 = vmul.f32 -1.442695, %v1678_v10 }
 0x35c   : > { %2266 = vpow2.f32 %v1860_v62 }
 0x362   : > { %v2267_v39 = vpop.eup %2266 }
 0x363   : > { %v1706_v6 = vadd.f32 1.0, %v2267_v39 }
 0x365   : > { %2268 = vrcp.f32 %v1706_v6  ;;  %vm1713_vm7 = vweird.f32 %v1706_v6  ;;  %v1719_v60 = vand.u32 2147483648, %v1706_v6  ;;  %v1717_v46 = vand.u32 2147483647, %v1706_v6 }
 0x367   : > { %v1720_v38 = vor.u32 1.1754944e-38, %v1719_v60  ;;  %vm1718_vm12 = vcmp.eq.f32.partialorder %v1717_v46, 8.507059e+37 }
 0x36b   : > { %v2269_v49 = vpop.eup %2268 }
 0x36c   : > { %v1709_v42 = vmul.f32 %v2269_v49, %v1706_v6  ;;  %vm1714_vm2 = vweird.f32 %v2269_v49 }
 0x36d   : > { %vm1715_vm8 = vmor %vm1713_vm7, %vm1714_vm2 }
 0x36e   : > { %v1710_v48 = vsub.f32 1.0, %v1709_v42 }
 0x370   : > { %v1711_v29 = vmul.f32 %v2269_v49, %v1710_v48 }
 0x372   : > { %v1712_v30 = vadd.f32 %v2269_v49, %v1711_v29 }
 0x374   : > { %v1716_v44 = vsel %vm1715_vm8, %v2269_v49, %v1712_v30 }
 0x375   : > { %v1721_v34 = vsel %vm1718_vm12, %v1720_v38, %v1716_v44 }
 0x377   : > { %v1697_v41 = vpop.f32.mrf.mxu1 }
 0x378   : > { %v1698_v26 = vadd.f32 %v1697_v41, %v1655_v16 }
 0x37a   : > { %v1861_v61 = vmul.f32 -1.442695, %v1698_v26 }
 0x37c   : > { %2270 = vpow2.f32 %v1861_v61 }
 0x382   : > { %v2271_v37 = vpop.eup %2270 }
 0x383   : > { %v1707_v59 = vadd.f32 1.0, %v2271_v37 }
 0x385   : > { %2272 = vrcp.f32 %v1707_v59  ;;  %v1734_v31 = vand.u32 2147483648, %v1707_v59  ;;  %v1732_v40 = vand.u32 2147483647, %v1707_v59  ;;  %vm1728_vm9 = vweird.f32 %v1707_v59 }
 0x387   : > { %v1735_v1 = vor.u32 1.1754944e-38, %v1734_v31  ;;  %vm1733_vm11 = vcmp.eq.f32.partialorder %v1732_v40, 8.507059e+37 }
 0x38b   : > { %v2273_v9 = vpop.eup %2272 }
 0x38c   : > { %v1724_v5 = vmul.f32 %v2273_v9, %v1707_v59  ;;  %vm1729_vm6 = vweird.f32 %v2273_v9 }
 0x38d   : > { %vm1730_vm10 = vmor %vm1728_vm9, %vm1729_vm6 }
 0x38e   : > { %v1725_v4 = vsub.f32 1.0, %v1724_v5 }
 0x390   : > { %v1726_v57 = vmul.f32 %v2273_v9, %v1725_v4 }
 0x392   : > { %v1727_v53 = vadd.f32 %v2273_v9, %v1726_v57 }
 0x394   : > { %v1731_v14 = vsel %vm1730_vm10, %v2273_v9, %v1727_v53 }
 0x395   : > { %v1736_v17 = vsel %vm1733_vm11, %v1735_v1, %v1731_v14 }
 0x396   : > { %v1740_v7 = vrot.slane %v1736_v17, 4 }
 0x398   : > { %v1741_v35 = vsel %vm380_vm0, %v1721_v34, %v1740_v7 }
 0x399   : > { %1743 = vst [vmem:[%s352_s28] sm:$0xff] %v1741_v35 }
 0x39a PF: > { %s19_s30 = sadd.s32 1, %s2281_s30  }
 0x39b   : > { %p16_p4 = scmp.ge.s32.totalorder %s19_s30, 4  }
 0x39d   :  { %18 = sbr.rel (!%p16_p4) target bundleno = 1 (0x1), region = 89 }

</bundles_post_ra>
